<compile_context>
chip_gen: v7x
topology: tpu7x:2x2x1
jax: 0.10.0
libtpu: 0.0.40
codegen_flags: <defaults>
</compile_context>

<pallas_src>
import functools

import jax
import jax.numpy as jnp
from jax.experimental import pallas as pl
from jax.experimental.pallas import tpu as pltpu

# Model constants (from QNetwork.__init__)
C_IN = 16           # input_shape[0]
H_IN, W_IN = 4, 4   # input spatial size
C1 = 256            # conv_depth_1
C2 = 256            # conv_depth_2
HID = 256           # hidden_units
OUT = 4             # output_units
OUT_PAD = 128       # fc2 output padded to one full 128-lane register (sliced host-side)
EPS = 1e-5          # BatchNorm2d eps

# Tap offsets of the fused (1,2)+(2,1) conv pair: (0,0) pre-summed, (0,1), (1,0).
_TAPS = ((0, 0), (0, 1), (1, 0))


def qnet_kernel(lhs1_ref, w1_ref, w2_ref, wfc1_ref, wfc2_ref, vec_ref, o_ref,
                y1_ref, lhs2_ref, y2_ref, lhs3_ref, *, batch):
    B = batch
    f32 = jnp.float32
    bf16 = jnp.bfloat16

    # ---- hoisted parameter loads (each weight slab read exactly once) ----------
    w1 = w1_ref[...]          # (48, 256)   bf16
    w2 = w2_ref[...]          # (768, 256)  bf16
    wfc1 = wfc1_ref[...]      # (1024, 256) bf16
    wfc2 = wfc2_ref[...]      # (256, 128)  bf16
    b1 = vec_ref[0:1, :]
    g1 = vec_ref[1:2, :]
    be1 = vec_ref[2:3, :]
    b2 = vec_ref[3:4, :]
    g2 = vec_ref[4:5, :]
    be2 = vec_ref[5:6, :]
    bfc1 = vec_ref[6:7, :]
    bfc2 = vec_ref[7:8, :OUT_PAD]

    # ---- stage 1: one im2col matmul over all 9 valid positions -----------------
    s1 = jnp.dot(lhs1_ref[...].astype(bf16), w1, preferred_element_type=f32) + b1

    # BatchNorm2d (training-mode batch stats, single pass) + ReLU.
    m1 = jnp.mean(s1, axis=0, keepdims=True)
    v1 = jnp.mean(s1 * s1, axis=0, keepdims=True) - m1 * m1
    y1_ref[...] = jnp.maximum((s1 - m1) * jax.lax.rsqrt(v1 + EPS) * g1 + be1, 0.0)

    # ---- stage 2: (4B, 768) im2col staged in VMEM, single matmul ---------------
    for p, (h, w) in enumerate(((0, 0), (0, 1), (1, 0), (1, 1))):
        for t, (dh, dw) in enumerate(_TAPS):
            q = (h + dh) * 3 + (w + dw)
            lhs2_ref[pl.ds(p * B, B), t * C1:(t + 1) * C1] = y1_ref[pl.ds(q * B, B), :]
    s2 = jnp.dot(lhs2_ref[...].astype(bf16), w2, preferred_element_type=f32) + b2

    m2 = jnp.mean(s2, axis=0, keepdims=True)
    v2 = jnp.mean(s2 * s2, axis=0, keepdims=True) - m2 * m2
    y2_ref[...] = jnp.maximum((s2 - m2) * jax.lax.rsqrt(v2 + EPS) * g2 + be2, 0.0)

    # ---- fc1: NCHW flatten presented as one (B, 1024) x (1024, 256) matmul -----
    for p in range(4):
        lhs3_ref[:, p * C2:(p + 1) * C2] = y2_ref[pl.ds(p * B, B), :]
    h1 = jnp.maximum(
        jnp.dot(lhs3_ref[...].astype(bf16), wfc1, preferred_element_type=f32) + bfc1,
        0.0)

    # ---- fc2 (output padded to 128 lanes; sliced to 4 in the wrapper) ----------
    o_ref[...] = jnp.dot(h1.astype(bf16), wfc2, preferred_element_type=f32) + bfc2


def pack_params(params):
    """One-time weight packing: bf16 slabs, pre-summed (0,0) taps, packed vectors."""
    bf16 = jnp.bfloat16

    def conv_cat(wa, wb):
        # rows: [tap(0,0) of both kernels summed, tap(0,1) of (1,2), tap(1,0) of (2,1)]
        return jnp.concatenate([wa[:, :, 0, 0].T + wb[:, :, 0, 0].T,
                                wa[:, :, 0, 1].T,
                                wb[:, :, 1, 0].T], axis=0)

    w1 = conv_cat(params["w1a"], params["w1b"]).astype(bf16)          # (3*C_IN, C1)
    w2 = conv_cat(params["w2a"], params["w2b"]).astype(bf16)          # (3*C1, C2)

    # fc1 weight (HID, C2*2*2) with NCHW flatten index c*4 + (h*2+w) -> (4*C2, HID),
    # position-major rows so that row = p*C2 + c matches the in-kernel fc1 lhs.
    wfc1 = jnp.transpose(params["fc1_w"].reshape(HID, C2, 4), (2, 1, 0)) \
              .reshape(4 * C2, HID).astype(bf16)                       # (1024, 256)
    wfc2 = jnp.zeros((HID, OUT_PAD), jnp.float32).at[:, :OUT] \
              .set(params["fc2_w"].T).astype(bf16)                     # (256, 128)

    vec = jnp.zeros((8, C1), jnp.float32)
    vec = vec.at[0].set(params["b1a"] + params["b1b"])
    vec = vec.at[1].set(params["g1"])
    vec = vec.at[2].set(params["be1"])
    vec = vec.at[3].set(params["b2a"] + params["b2b"])
    vec = vec.at[4].set(params["g2"])
    vec = vec.at[5].set(params["be2"])
    vec = vec.at[6].set(params["fc1_b"])
    vec = vec.at[7, :OUT].set(params["fc2_b"])
    return {"w1": w1, "w2": w2, "wfc1": wfc1, "wfc2": wfc2, "vec": vec}


@jax.jit
def qnetwork_forward(x_nchw, packed):
    """x_nchw: (B, 16, 4, 4) float32 NCHW; packed: output of pack_params()."""
    B = x_nchw.shape[0]

    # Stage-1 im2col built in XLA (tiny: 9B x 48 floats):
    #   row = (h*3 + w)*B + b,  cols = [x(h,w), x(h,w+1), x(h+1,w)] channel triplets.
    xhwbc = jnp.transpose(x_nchw, (2, 3, 0, 1))                        # (H, W, B, C)
    lhs1 = jnp.concatenate(
        [jnp.concatenate([xhwbc[h, w], xhwbc[h, w + 1], xhwbc[h + 1, w]], axis=-1)
         for h in range(3) for w in range(3)], axis=0)                 # (9B, 3*C_IN)

    kernel = functools.partial(qnet_kernel, batch=B)
    vmem = pl.BlockSpec(memory_space=pltpu.MemorySpace.VMEM)
    out = pl.pallas_call(
        kernel,
        out_shape=jax.ShapeDtypeStruct((B, OUT_PAD), jnp.float32),
        in_specs=[vmem] * 6,
        out_specs=vmem,
        scratch_shapes=[pltpu.VMEM((9 * B, C1), jnp.float32),      # y1 (BN+ReLU stage 1)
                        pltpu.VMEM((4 * B, 3 * C1), jnp.float32),  # stage-2 im2col lhs
                        pltpu.VMEM((4 * B, C2), jnp.float32),      # y2 (BN+ReLU stage 2)
                        pltpu.VMEM((B, 4 * C2), jnp.float32)],     # fc1 lhs
    )(lhs1, packed["w1"], packed["w2"], packed["wfc1"], packed["wfc2"], packed["vec"])
    return out[:, :OUT]


def init_params(key):
    ks = jax.random.split(key, 16)

    def w(k, shape, fan_in):
        return jax.random.normal(k, shape, jnp.float32) / jnp.sqrt(float(fan_in))

    p = {}
    p["w1a"] = w(ks[0], (C1, C_IN, 1, 2), C_IN * 2)
    p["b1a"] = 0.01 * jax.random.normal(ks[1], (C1,), jnp.float32)
    p["w1b"] = w(ks[2], (C1, C_IN, 2, 1), C_IN * 2)
    p["b1b"] = 0.01 * jax.random.normal(ks[3], (C1,), jnp.float32)
    p["w2a"] = w(ks[4], (C2, C1, 1, 2), C1 * 2)
    p["b2a"] = 0.01 * jax.random.normal(ks[5], (C2,), jnp.float32)
    p["w2b"] = w(ks[6], (C2, C1, 2, 1), C1 * 2)
    p["b2b"] = 0.01 * jax.random.normal(ks[7], (C2,), jnp.float32)
    p["g1"] = 1.0 + 0.1 * jax.random.normal(ks[8], (C1,), jnp.float32)
    p["be1"] = 0.1 * jax.random.normal(ks[9], (C1,), jnp.float32)
    p["g2"] = 1.0 + 0.1 * jax.random.normal(ks[10], (C2,), jnp.float32)
    p["be2"] = 0.1 * jax.random.normal(ks[11], (C2,), jnp.float32)
    p["fc1_w"] = w(ks[12], (HID, C2 * 2 * 2), C2 * 4)
    p["fc1_b"] = 0.01 * jax.random.normal(ks[13], (HID,), jnp.float32)
    p["fc2_w"] = w(ks[14], (OUT, HID), HID)
    p["fc2_b"] = 0.01 * jax.random.normal(ks[15], (OUT,), jnp.float32)
    return p


def reference_forward(x, p):
    """Pure-JAX (XLA, f32) reference mirroring the PyTorch module semantics."""

    def conv(x, w, b):
        y = jax.lax.conv_general_dilated(x, w, window_strides=(1, 1), padding="VALID",
                                         dimension_numbers=("NCHW", "OIHW", "NCHW"))
        return y + b[None, :, None, None]

    def bn_relu(x, g, be):
        m = jnp.mean(x, axis=(0, 2, 3), keepdims=True)
        v = jnp.mean(jnp.square(x - m), axis=(0, 2, 3), keepdims=True)
        return jax.nn.relu((x - m) * jax.lax.rsqrt(v + EPS) * g[None, :, None, None]
                           + be[None, :, None, None])

    s1 = (conv(x, p["w1a"], p["b1a"])[:, :, :3, :3]
          + conv(x, p["w1b"], p["b1b"])[:, :, :3, :3])
    h1 = bn_relu(s1, p["g1"], p["be1"])
    s2 = (conv(h1, p["w2a"], p["b2a"])[:, :, :2, :2]
          + conv(h1, p["w2b"], p["b2b"])[:, :, :2, :2])
    h2 = bn_relu(s2, p["g2"], p["be2"])
    z = h2.reshape(h2.shape[0], -1)                     # NCHW flatten, like x.view(B, -1)
    z = jax.nn.relu(z @ p["fc1_w"].T + p["fc1_b"])
    return z @ p["fc2_w"].T + p["fc2_b"]


if __name__ == "__main__":
    key = jax.random.PRNGKey(0)
    kx, kp = jax.random.split(key)

    B = 2
    x = jax.random.normal(kx, (B, C_IN, H_IN, W_IN), jnp.float32)   # NCHW, like PyTorch
    params = init_params(kp)
    packed = pack_params(params)                                    # one-time packing

    out = qnetwork_forward(x, packed)
    out = jax.block_until_ready(out)

    ref = reference_forward(x, params)
    err = float(jnp.max(jnp.abs(out - ref)))
    scale = float(jnp.max(jnp.abs(ref))) + 1e-6
    assert out.shape == (B, OUT), out.shape
    assert err <= 5e-2 * max(1.0, scale), f"max abs err {err} vs ref scale {scale}"
    print("KERNEL_OK")
</pallas_src>

<mosaic_0001>
module attributes {stable_mosaic.version = 11 : i64} {
  func.func @qnet_kernel(%arg0: memref<18x48xf32, #tpu.memory_space<vmem>>, %arg1: memref<48x256xbf16, #tpu.memory_space<vmem>>, %arg2: memref<768x256xbf16, #tpu.memory_space<vmem>>, %arg3: memref<1024x256xbf16, #tpu.memory_space<vmem>>, %arg4: memref<256x128xbf16, #tpu.memory_space<vmem>>, %arg5: memref<8x256xf32, #tpu.memory_space<vmem>>, %arg6: memref<2x128xf32, #tpu.memory_space<vmem>>, %arg7: memref<18x256xf32, #tpu.memory_space<vmem>>, %arg8: memref<8x768xf32, #tpu.memory_space<vmem>>, %arg9: memref<8x256xf32, #tpu.memory_space<vmem>>, %arg10: memref<2x1024xf32, #tpu.memory_space<vmem>>) attributes {dimension_semantics = [], scalar_prefetch = 0 : i64, scratch_operands = 4 : i64, tpu.core_type = #tpu.core_type<tc>} {
    %c0 = arith.constant 0 : index
    %c0_0 = arith.constant 0 : index
    %0 = vector.load %arg1[%c0, %c0_0] : memref<48x256xbf16, #tpu.memory_space<vmem>>, vector<48x256xbf16>
    %c0_1 = arith.constant 0 : index
    %c0_2 = arith.constant 0 : index
    %1 = vector.load %arg2[%c0_1, %c0_2] : memref<768x256xbf16, #tpu.memory_space<vmem>>, vector<768x256xbf16>
    %c0_3 = arith.constant 0 : index
    %c0_4 = arith.constant 0 : index
    %2 = vector.load %arg3[%c0_3, %c0_4] : memref<1024x256xbf16, #tpu.memory_space<vmem>>, vector<1024x256xbf16>
    %c0_5 = arith.constant 0 : index
    %c0_6 = arith.constant 0 : index
    %3 = vector.load %arg4[%c0_5, %c0_6] : memref<256x128xbf16, #tpu.memory_space<vmem>>, vector<256x128xbf16>
    %c0_7 = arith.constant 0 : index
    %c0_8 = arith.constant 0 : index
    %4 = vector.load %arg5[%c0_7, %c0_8] : memref<8x256xf32, #tpu.memory_space<vmem>>, vector<1x256xf32>
    %c1 = arith.constant 1 : index
    %c0_9 = arith.constant 0 : index
    %5 = vector.load %arg5[%c1, %c0_9] : memref<8x256xf32, #tpu.memory_space<vmem>>, vector<1x256xf32>
    %c2 = arith.constant 2 : index
    %c0_10 = arith.constant 0 : index
    %6 = vector.load %arg5[%c2, %c0_10] : memref<8x256xf32, #tpu.memory_space<vmem>>, vector<1x256xf32>
    %c3 = arith.constant 3 : index
    %c0_11 = arith.constant 0 : index
    %7 = vector.load %arg5[%c3, %c0_11] : memref<8x256xf32, #tpu.memory_space<vmem>>, vector<1x256xf32>
    %c4 = arith.constant 4 : index
    %c0_12 = arith.constant 0 : index
    %8 = vector.load %arg5[%c4, %c0_12] : memref<8x256xf32, #tpu.memory_space<vmem>>, vector<1x256xf32>
    %c5 = arith.constant 5 : index
    %c0_13 = arith.constant 0 : index
    %9 = vector.load %arg5[%c5, %c0_13] : memref<8x256xf32, #tpu.memory_space<vmem>>, vector<1x256xf32>
    %c6 = arith.constant 6 : index
    %c0_14 = arith.constant 0 : index
    %10 = vector.load %arg5[%c6, %c0_14] : memref<8x256xf32, #tpu.memory_space<vmem>>, vector<1x256xf32>
    %c7 = arith.constant 7 : index
    %c0_15 = arith.constant 0 : index
    %11 = vector.load %arg5[%c7, %c0_15] : memref<8x256xf32, #tpu.memory_space<vmem>>, vector<1x128xf32>
    %c0_16 = arith.constant 0 : index
    %c0_17 = arith.constant 0 : index
    %12 = vector.load %arg0[%c0_16, %c0_17] : memref<18x48xf32, #tpu.memory_space<vmem>>, vector<18x48xf32>
    %13 = arith.truncf %12 : vector<18x48xf32> to vector<18x48xbf16>
    %cst = arith.constant dense<0.000000e+00> : vector<18x256xf32>
    %14 = tpu.matmul %13, %0, %cst {dimension_numbers = #tpu.dot_dimension_numbers<[1], [0], [0], [1], [0, 0, 1, 1], [], []>} : vector<18x48xbf16>, vector<48x256xbf16>, vector<18x256xf32> -> vector<18x256xf32>
    %15 = vector.broadcast %4 : vector<1x256xf32> to vector<18x256xf32>
    %16 = arith.addf %14, %15 : vector<18x256xf32>
    %cst_18 = arith.constant dense<0.000000e+00> : vector<256xf32>
    %17 = vector.multi_reduction <add>, %16, %cst_18 [0] : vector<18x256xf32> to vector<256xf32>
    %18 = vector.shape_cast %17 : vector<256xf32> to vector<1x256xf32>
    %cst_19 = arith.constant 1.800000e+01 : f32
    %19 = vector.broadcast %cst_19 : f32 to vector<1x256xf32>
    %20 = arith.divf %18, %19 : vector<1x256xf32>
    %21 = arith.mulf %16, %16 : vector<18x256xf32>
    %cst_20 = arith.constant dense<0.000000e+00> : vector<256xf32>
    %22 = vector.multi_reduction <add>, %21, %cst_20 [0] : vector<18x256xf32> to vector<256xf32>
    %23 = vector.shape_cast %22 : vector<256xf32> to vector<1x256xf32>
    %cst_21 = arith.constant 1.800000e+01 : f32
    %24 = vector.broadcast %cst_21 : f32 to vector<1x256xf32>
    %25 = arith.divf %23, %24 : vector<1x256xf32>
    %26 = arith.mulf %20, %20 : vector<1x256xf32>
    %27 = arith.subf %25, %26 : vector<1x256xf32>
    %28 = vector.broadcast %20 : vector<1x256xf32> to vector<18x256xf32>
    %29 = arith.subf %16, %28 : vector<18x256xf32>
    %cst_22 = arith.constant 9.99999974E-6 : f32
    %30 = vector.broadcast %cst_22 : f32 to vector<1x256xf32>
    %31 = arith.addf %27, %30 : vector<1x256xf32>
    %32 = math.rsqrt %31 : vector<1x256xf32>
    %33 = vector.broadcast %32 : vector<1x256xf32> to vector<18x256xf32>
    %34 = arith.mulf %29, %33 : vector<18x256xf32>
    %35 = vector.broadcast %5 : vector<1x256xf32> to vector<18x256xf32>
    %36 = arith.mulf %34, %35 : vector<18x256xf32>
    %37 = vector.broadcast %6 : vector<1x256xf32> to vector<18x256xf32>
    %38 = arith.addf %36, %37 : vector<18x256xf32>
    %cst_23 = arith.constant 0.000000e+00 : f32
    %39 = vector.broadcast %cst_23 : f32 to vector<18x256xf32>
    %40 = arith.maximumf %38, %39 : vector<18x256xf32>
    %c0_24 = arith.constant 0 : index
    %c0_25 = arith.constant 0 : index
    %41 = vector.load %arg7[%c0_24, %c0_25] : memref<18x256xf32, #tpu.memory_space<vmem>>, vector<18x256xf32>
    tpu.vector_store %arg7[%c0_24, %c0_25], %40 {strides = array<i32>} : memref<18x256xf32, #tpu.memory_space<vmem>>, vector<18x256xf32>,
    %c0_26 = arith.constant 0 : index
    %c0_27 = arith.constant 0 : index
    %42 = vector.load %arg7[%c0_26, %c0_27] : memref<18x256xf32, #tpu.memory_space<vmem>>, vector<2x256xf32>
    %c0_28 = arith.constant 0 : index
    %c0_29 = arith.constant 0 : index
    %43 = vector.load %arg8[%c0_28, %c0_29] : memref<8x768xf32, #tpu.memory_space<vmem>>, vector<2x256xf32>
    tpu.vector_store %arg8[%c0_28, %c0_29], %42 {strides = array<i32>} : memref<8x768xf32, #tpu.memory_space<vmem>>, vector<2x256xf32>,
    %c2_30 = arith.constant 2 : index
    %c0_31 = arith.constant 0 : index
    %44 = vector.load %arg7[%c2_30, %c0_31] : memref<18x256xf32, #tpu.memory_space<vmem>>, vector<2x256xf32>
    %c0_32 = arith.constant 0 : index
    %c256 = arith.constant 256 : index
    %45 = vector.load %arg8[%c0_32, %c256] : memref<8x768xf32, #tpu.memory_space<vmem>>, vector<2x256xf32>
    tpu.vector_store %arg8[%c0_32, %c256], %44 {strides = array<i32>} : memref<8x768xf32, #tpu.memory_space<vmem>>, vector<2x256xf32>,
    %c6_33 = arith.constant 6 : index
    %c0_34 = arith.constant 0 : index
    %46 = vector.load %arg7[%c6_33, %c0_34] : memref<18x256xf32, #tpu.memory_space<vmem>>, vector<2x256xf32>
    %c0_35 = arith.constant 0 : index
    %c512 = arith.constant 512 : index
    %47 = vector.load %arg8[%c0_35, %c512] : memref<8x768xf32, #tpu.memory_space<vmem>>, vector<2x256xf32>
    tpu.vector_store %arg8[%c0_35, %c512], %46 {strides = array<i32>} : memref<8x768xf32, #tpu.memory_space<vmem>>, vector<2x256xf32>,
    %c2_36 = arith.constant 2 : index
    %c0_37 = arith.constant 0 : index
    %48 = vector.load %arg7[%c2_36, %c0_37] : memref<18x256xf32, #tpu.memory_space<vmem>>, vector<2x256xf32>
    %c2_38 = arith.constant 2 : index
    %c0_39 = arith.constant 0 : index
    %49 = vector.load %arg8[%c2_38, %c0_39] : memref<8x768xf32, #tpu.memory_space<vmem>>, vector<2x256xf32>
    tpu.vector_store %arg8[%c2_38, %c0_39], %48 {strides = array<i32>} : memref<8x768xf32, #tpu.memory_space<vmem>>, vector<2x256xf32>,
    %c4_40 = arith.constant 4 : index
    %c0_41 = arith.constant 0 : index
    %50 = vector.load %arg7[%c4_40, %c0_41] : memref<18x256xf32, #tpu.memory_space<vmem>>, vector<2x256xf32>
    %c2_42 = arith.constant 2 : index
    %c256_43 = arith.constant 256 : index
    %51 = vector.load %arg8[%c2_42, %c256_43] : memref<8x768xf32, #tpu.memory_space<vmem>>, vector<2x256xf32>
    tpu.vector_store %arg8[%c2_42, %c256_43], %50 {strides = array<i32>} : memref<8x768xf32, #tpu.memory_space<vmem>>, vector<2x256xf32>,
    %c8 = arith.constant 8 : index
    %c0_44 = arith.constant 0 : index
    %52 = vector.load %arg7[%c8, %c0_44] : memref<18x256xf32, #tpu.memory_space<vmem>>, vector<2x256xf32>
    %c2_45 = arith.constant 2 : index
    %c512_46 = arith.constant 512 : index
    %53 = vector.load %arg8[%c2_45, %c512_46] : memref<8x768xf32, #tpu.memory_space<vmem>>, vector<2x256xf32>
    tpu.vector_store %arg8[%c2_45, %c512_46], %52 {strides = array<i32>} : memref<8x768xf32, #tpu.memory_space<vmem>>, vector<2x256xf32>,
    %c6_47 = arith.constant 6 : index
    %c0_48 = arith.constant 0 : index
    %54 = vector.load %arg7[%c6_47, %c0_48] : memref<18x256xf32, #tpu.memory_space<vmem>>, vector<2x256xf32>
    %c4_49 = arith.constant 4 : index
    %c0_50 = arith.constant 0 : index
    %55 = vector.load %arg8[%c4_49, %c0_50] : memref<8x768xf32, #tpu.memory_space<vmem>>, vector<2x256xf32>
    tpu.vector_store %arg8[%c4_49, %c0_50], %54 {strides = array<i32>} : memref<8x768xf32, #tpu.memory_space<vmem>>, vector<2x256xf32>,
    %c8_51 = arith.constant 8 : index
    %c0_52 = arith.constant 0 : index
    %56 = vector.load %arg7[%c8_51, %c0_52] : memref<18x256xf32, #tpu.memory_space<vmem>>, vector<2x256xf32>
    %c4_53 = arith.constant 4 : index
    %c256_54 = arith.constant 256 : index
    %57 = vector.load %arg8[%c4_53, %c256_54] : memref<8x768xf32, #tpu.memory_space<vmem>>, vector<2x256xf32>
    tpu.vector_store %arg8[%c4_53, %c256_54], %56 {strides = array<i32>} : memref<8x768xf32, #tpu.memory_space<vmem>>, vector<2x256xf32>,
    %c12 = arith.constant 12 : index
    %c0_55 = arith.constant 0 : index
    %58 = vector.load %arg7[%c12, %c0_55] : memref<18x256xf32, #tpu.memory_space<vmem>>, vector<2x256xf32>
    %c4_56 = arith.constant 4 : index
    %c512_57 = arith.constant 512 : index
    %59 = vector.load %arg8[%c4_56, %c512_57] : memref<8x768xf32, #tpu.memory_space<vmem>>, vector<2x256xf32>
    tpu.vector_store %arg8[%c4_56, %c512_57], %58 {strides = array<i32>} : memref<8x768xf32, #tpu.memory_space<vmem>>, vector<2x256xf32>,
    %c8_58 = arith.constant 8 : index
    %c0_59 = arith.constant 0 : index
    %60 = vector.load %arg7[%c8_58, %c0_59] : memref<18x256xf32, #tpu.memory_space<vmem>>, vector<2x256xf32>
    %c6_60 = arith.constant 6 : index
    %c0_61 = arith.constant 0 : index
    %61 = vector.load %arg8[%c6_60, %c0_61] : memref<8x768xf32, #tpu.memory_space<vmem>>, vector<2x256xf32>
    tpu.vector_store %arg8[%c6_60, %c0_61], %60 {strides = array<i32>} : memref<8x768xf32, #tpu.memory_space<vmem>>, vector<2x256xf32>,
    %c10 = arith.constant 10 : index
    %c0_62 = arith.constant 0 : index
    %62 = vector.load %arg7[%c10, %c0_62] : memref<18x256xf32, #tpu.memory_space<vmem>>, vector<2x256xf32>
    %c6_63 = arith.constant 6 : index
    %c256_64 = arith.constant 256 : index
    %63 = vector.load %arg8[%c6_63, %c256_64] : memref<8x768xf32, #tpu.memory_space<vmem>>, vector<2x256xf32>
    tpu.vector_store %arg8[%c6_63, %c256_64], %62 {strides = array<i32>} : memref<8x768xf32, #tpu.memory_space<vmem>>, vector<2x256xf32>,
    %c14 = arith.constant 14 : index
    %c0_65 = arith.constant 0 : index
    %64 = vector.load %arg7[%c14, %c0_65] : memref<18x256xf32, #tpu.memory_space<vmem>>, vector<2x256xf32>
    %c6_66 = arith.constant 6 : index
    %c512_67 = arith.constant 512 : index
    %65 = vector.load %arg8[%c6_66, %c512_67] : memref<8x768xf32, #tpu.memory_space<vmem>>, vector<2x256xf32>
    tpu.vector_store %arg8[%c6_66, %c512_67], %64 {strides = array<i32>} : memref<8x768xf32, #tpu.memory_space<vmem>>, vector<2x256xf32>,
    %c0_68 = arith.constant 0 : index
    %c0_69 = arith.constant 0 : index
    %66 = vector.load %arg8[%c0_68, %c0_69] : memref<8x768xf32, #tpu.memory_space<vmem>>, vector<8x768xf32>
    %67 = arith.truncf %66 : vector<8x768xf32> to vector<8x768xbf16>
    %cst_70 = arith.constant dense<0.000000e+00> : vector<8x256xf32>
    %68 = tpu.matmul %67, %1, %cst_70 {dimension_numbers = #tpu.dot_dimension_numbers<[1], [0], [0], [1], [0, 0, 1, 1], [], []>} : vector<8x768xbf16>, vector<768x256xbf16>, vector<8x256xf32> -> vector<8x256xf32>
    %69 = vector.broadcast %7 : vector<1x256xf32> to vector<8x256xf32>
    %70 = arith.addf %68, %69 : vector<8x256xf32>
    %cst_71 = arith.constant dense<0.000000e+00> : vector<256xf32>
    %71 = vector.multi_reduction <add>, %70, %cst_71 [0] : vector<8x256xf32> to vector<256xf32>
    %72 = vector.shape_cast %71 : vector<256xf32> to vector<1x256xf32>
    %cst_72 = arith.constant 8.000000e+00 : f32
    %73 = vector.broadcast %cst_72 : f32 to vector<1x256xf32>
    %74 = arith.divf %72, %73 : vector<1x256xf32>
    %75 = arith.mulf %70, %70 : vector<8x256xf32>
    %cst_73 = arith.constant dense<0.000000e+00> : vector<256xf32>
    %76 = vector.multi_reduction <add>, %75, %cst_73 [0] : vector<8x256xf32> to vector<256xf32>
    %77 = vector.shape_cast %76 : vector<256xf32> to vector<1x256xf32>
    %cst_74 = arith.constant 8.000000e+00 : f32
    %78 = vector.broadcast %cst_74 : f32 to vector<1x256xf32>
    %79 = arith.divf %77, %78 : vector<1x256xf32>
    %80 = arith.mulf %74, %74 : vector<1x256xf32>
    %81 = arith.subf %79, %80 : vector<1x256xf32>
    %82 = vector.broadcast %74 : vector<1x256xf32> to vector<8x256xf32>
    %83 = arith.subf %70, %82 : vector<8x256xf32>
    %cst_75 = arith.constant 9.99999974E-6 : f32
    %84 = vector.broadcast %cst_75 : f32 to vector<1x256xf32>
    %85 = arith.addf %81, %84 : vector<1x256xf32>
    %86 = math.rsqrt %85 : vector<1x256xf32>
    %87 = vector.broadcast %86 : vector<1x256xf32> to vector<8x256xf32>
    %88 = arith.mulf %83, %87 : vector<8x256xf32>
    %89 = vector.broadcast %8 : vector<1x256xf32> to vector<8x256xf32>
    %90 = arith.mulf %88, %89 : vector<8x256xf32>
    %91 = vector.broadcast %9 : vector<1x256xf32> to vector<8x256xf32>
    %92 = arith.addf %90, %91 : vector<8x256xf32>
    %cst_76 = arith.constant 0.000000e+00 : f32
    %93 = vector.broadcast %cst_76 : f32 to vector<8x256xf32>
    %94 = arith.maximumf %92, %93 : vector<8x256xf32>
    %c0_77 = arith.constant 0 : index
    %c0_78 = arith.constant 0 : index
    %95 = vector.load %arg9[%c0_77, %c0_78] : memref<8x256xf32, #tpu.memory_space<vmem>>, vector<8x256xf32>
    tpu.vector_store %arg9[%c0_77, %c0_78], %94 {strides = array<i32>} : memref<8x256xf32, #tpu.memory_space<vmem>>, vector<8x256xf32>,
    %c0_79 = arith.constant 0 : index
    %c0_80 = arith.constant 0 : index
    %96 = vector.load %arg9[%c0_79, %c0_80] : memref<8x256xf32, #tpu.memory_space<vmem>>, vector<2x256xf32>
    %c0_81 = arith.constant 0 : index
    %c0_82 = arith.constant 0 : index
    %97 = vector.load %arg10[%c0_81, %c0_82] : memref<2x1024xf32, #tpu.memory_space<vmem>>, vector<2x256xf32>
    tpu.vector_store %arg10[%c0_81, %c0_82], %96 {strides = array<i32>} : memref<2x1024xf32, #tpu.memory_space<vmem>>, vector<2x256xf32>,
    %c2_83 = arith.constant 2 : index
    %c0_84 = arith.constant 0 : index
    %98 = vector.load %arg9[%c2_83, %c0_84] : memref<8x256xf32, #tpu.memory_space<vmem>>, vector<2x256xf32>
    %c0_85 = arith.constant 0 : index
    %c256_86 = arith.constant 256 : index
    %99 = vector.load %arg10[%c0_85, %c256_86] : memref<2x1024xf32, #tpu.memory_space<vmem>>, vector<2x256xf32>
    tpu.vector_store %arg10[%c0_85, %c256_86], %98 {strides = array<i32>} : memref<2x1024xf32, #tpu.memory_space<vmem>>, vector<2x256xf32>,
    %c4_87 = arith.constant 4 : index
    %c0_88 = arith.constant 0 : index
    %100 = vector.load %arg9[%c4_87, %c0_88] : memref<8x256xf32, #tpu.memory_space<vmem>>, vector<2x256xf32>
    %c0_89 = arith.constant 0 : index
    %c512_90 = arith.constant 512 : index
    %101 = vector.load %arg10[%c0_89, %c512_90] : memref<2x1024xf32, #tpu.memory_space<vmem>>, vector<2x256xf32>
    tpu.vector_store %arg10[%c0_89, %c512_90], %100 {strides = array<i32>} : memref<2x1024xf32, #tpu.memory_space<vmem>>, vector<2x256xf32>,
    %c6_91 = arith.constant 6 : index
    %c0_92 = arith.constant 0 : index
    %102 = vector.load %arg9[%c6_91, %c0_92] : memref<8x256xf32, #tpu.memory_space<vmem>>, vector<2x256xf32>
    %c0_93 = arith.constant 0 : index
    %c768 = arith.constant 768 : index
    %103 = vector.load %arg10[%c0_93, %c768] : memref<2x1024xf32, #tpu.memory_space<vmem>>, vector<2x256xf32>
    tpu.vector_store %arg10[%c0_93, %c768], %102 {strides = array<i32>} : memref<2x1024xf32, #tpu.memory_space<vmem>>, vector<2x256xf32>,
    %c0_94 = arith.constant 0 : index
    %c0_95 = arith.constant 0 : index
    %104 = vector.load %arg10[%c0_94, %c0_95] : memref<2x1024xf32, #tpu.memory_space<vmem>>, vector<2x1024xf32>
    %105 = arith.truncf %104 : vector<2x1024xf32> to vector<2x1024xbf16>
    %cst_96 = arith.constant dense<0.000000e+00> : vector<2x256xf32>
    %106 = tpu.matmul %105, %2, %cst_96 {dimension_numbers = #tpu.dot_dimension_numbers<[1], [0], [0], [1], [0, 0, 1, 1], [], []>} : vector<2x1024xbf16>, vector<1024x256xbf16>, vector<2x256xf32> -> vector<2x256xf32>
    %107 = vector.broadcast %10 : vector<1x256xf32> to vector<2x256xf32>
    %108 = arith.addf %106, %107 : vector<2x256xf32>
    %cst_97 = arith.constant 0.000000e+00 : f32
    %109 = vector.broadcast %cst_97 : f32 to vector<2x256xf32>
    %110 = arith.maximumf %108, %109 : vector<2x256xf32>
    %111 = arith.truncf %110 : vector<2x256xf32> to vector<2x256xbf16>
    %cst_98 = arith.constant dense<0.000000e+00> : vector<2x128xf32>
    %112 = tpu.matmul %111, %3, %cst_98 {dimension_numbers = #tpu.dot_dimension_numbers<[1], [0], [0], [1], [0, 0, 1, 1], [], []>} : vector<2x256xbf16>, vector<256x128xbf16>, vector<2x128xf32> -> vector<2x128xf32>
    %113 = vector.broadcast %11 : vector<1x128xf32> to vector<2x128xf32>
    %114 = arith.addf %112, %113 : vector<2x128xf32>
    %c0_99 = arith.constant 0 : index
    %c0_100 = arith.constant 0 : index
    %115 = vector.load %arg6[%c0_99, %c0_100] : memref<2x128xf32, #tpu.memory_space<vmem>>, vector<2x128xf32>
    tpu.vector_store %arg6[%c0_99, %c0_100], %114 {strides = array<i32>} : memref<2x128xf32, #tpu.memory_space<vmem>>, vector<2x128xf32>,
    return
  }
}

</mosaic_0001>

<bundles_post_ra>
// kernel: qnetwork_forward.1
= control target key start
LH: loop header
LB: loop body
LE: loop exit
PB: predicated region body
PF: predicated region fallthrough
CT: control target
= control target key end

     0   :  { %11 = vsyncpa [#allocation7], 0  ;;  %s3437_s0 = inlined_call_operand.vmem [shape: f32[18,48], index: 0, kind: input, shape index: {}]   ;;  %s3438_s1 = inlined_call_operand.vmem [shape: bf16[48,256], index: 1, kind: input, shape index: {}]   ;;  %s3439_s2 = inlined_call_operand.hbm [shape: bf16[768,256], index: 2, kind: input, shape index: {}]   ;;  %s3440_s3 = inlined_call_operand.hbm [shape: bf16[1024,256], index: 3, kind: input, shape index: {}]   ;;  %s3441_s4 = inlined_call_operand.vmem [shape: bf16[256,128], index: 4, kind: input, shape index: {}]   ;;  %s3442_s5 = inlined_call_operand.vmem [shape: f32[8,256], index: 5, kind: input, shape index: {}]   ;;  %s3443_s6 = inlined_call_operand.hbm [shape: f32[2,128], index: 6, kind: output, shape index: {}]  }
   0x1   :  { %12 = vsyncpa [#allocation10], 0 }
   0x2   :  { %13 = vsyncpa [#allocation8], 0  ;;  %s3182_s21 = smov [#allocation6]   ;;  %s3110_s25 = scalar_lea.hbm %s3439_s2, 12288 }
   0x3   :  { %s23_s22 = sshll.u32 %s3182_s21, 4  ;;  %p3111_p0 = scmp.ne.s32.totalorder %s3439_s2, %s3110_s25  ;;  %s24_s22 = int_to_ptr.vmem [resolvable:$true] %s23_s22 }
   0x4   :  { %p3114_p1 = scmp.lt.u32.totalorder %s3110_s25, %s3439_s2 }
   0x6   :  { %p3116_p2 = pnand %p3114_p1, %p3111_p0 }
   0x8   :  { %3119 = shalt.err (!%p3116_p2)
}
   0x9   :  { %s3120_s30 = scalar_lea.vmem %s24_s22, 12288  ;;  %p3125_p4 = scmp.lt.s32.totalorder %s24_s22, %s24_s22 }
   0xa   :  { %p3121_p3 = scmp.ne.s32.totalorder %s24_s22, %s3120_s30  ;;  %p3126_p5 = scmp.lt.s32.totalorder %s3120_s30, %s3120_s30 }
   0xc   :  { %p3127_p6 = por %p3126_p5, %p3125_p4 }
   0xe   :  { %p3128_p7 = pnand %p3127_p6, %p3121_p3 }
  0x10   :  { %3131 = shalt.err (!%p3128_p7)
}
  0x11   :  { %s3183_s7 = smov 128   ;;  %s3184_s8 = smov 8  }
  0x12   :  { %29 = dma.hbm_to_vmem [thread:$0]  %s3439_s2, 12288, %s24_s22, [#allocation7], %s3183_s7, %s3183_s7, %s3184_s8  }
  0x13   :  { %s3185_s11 = smov [#allocation9]   ;;  %s3132_s15 = scalar_lea.hbm %s3440_s3, 16384 }
  0x14   :  { %s35_s12 = sshll.u32 %s3185_s11, 4  ;;  %p3133_p8 = scmp.ne.s32.totalorder %s3440_s3, %s3132_s15  ;;  %s36_s12 = int_to_ptr.vmem [resolvable:$true] %s35_s12 }
  0x15   :  { %p3136_p9 = scmp.lt.u32.totalorder %s3132_s15, %s3440_s3 }
  0x17   :  { %p3138_p10 = pnand %p3136_p9, %p3133_p8 }
  0x19   :  { %3141 = shalt.err (!%p3138_p10)
}
  0x1a   :  { %s3142_s20 = scalar_lea.vmem %s36_s12, 16384  ;;  %p3147_p12 = scmp.lt.s32.totalorder %s36_s12, %s36_s12 }
  0x1b   :  { %p3143_p11 = scmp.ne.s32.totalorder %s36_s12, %s3142_s20  ;;  %p3148_p13 = scmp.lt.s32.totalorder %s3142_s20, %s3142_s20 }
  0x1d   :  { %p3149_p0 = por %p3148_p13, %p3147_p12 }
  0x1f   :  { %p3150_p1 = pnand %p3149_p0, %p3143_p11 }
  0x21   :  { %3153 = shalt.err (!%p3150_p1)
}
  0x22   :  { %41 = dma.hbm_to_vmem [thread:$0]  %s3440_s3, 16384, %s36_s12, [#allocation10], %s3183_s7, %s3183_s7, %s3184_s8  }
  0x23   :  { %3176 = dma.done.wait [#allocation7], 12288  }
  0x24   :  { %3177 = vsyncadd [#allocation7], 4294955008 }
  0x25   :  { %3178 = dma.done.wait [#allocation10], 16384  }
  0x26   :  { %3179 = vsyncadd [#allocation10], 4294950912  ;;  %v3186_v0 = vmov 0   ;;  %v2735_v1 = vld [vmem:[%s3438_s1 + $0x4] ss:$8 sps:$4 sm:$0xff]   ;;  %vm375_vm0 = vcmask 392192   ;;  %v335_v45 = vlaneseq }
  0x27   :  { %414 = vmatprep.mubr.bf16.mxu1 %v3186_v0  ;;  %v2737_v2 = vld [vmem:[%s3438_s1] ss:$8 sps:$4 sm:$0xff]   ;;  %382 = vmatprep.subr.bf16.mxu1 %v2735_v1  ;;  %v2738_v3 = vld [vmem:[%s3438_s1 + $0x14] ss:$8 sps:$4 sm:$0xff]   ;;  %v2740_v4 = vld [vmem:[%s3438_s1 + $0x10] ss:$8 sps:$4 sm:$0xff]  }
  0x28   :  { %383 = vmatpush1.bf16.msra.mxu1 %v2737_v2  ;;  %v2741_v5 = vld [vmem:[%s3438_s1 + $0x24] ss:$8 sps:$4 sm:$0xff]   ;;  %v2743_v6 = vld [vmem:[%s3438_s1 + $0x20] ss:$8 sps:$4 sm:$0xff]   ;;  %v331_v10 = vld [vmem:[%s3437_s0 + $0x10] sm:$0x3] }
  0x29   :  { %384 = vmatprep.subr.bf16.mxu1 %v2738_v3  ;;  %v329_v7 = vld [vmem:[%s3437_s0] sm:$0xff]  ;;  %v330_v8 = vld [vmem:[%s3437_s0 + $0x8] sm:$0xff]  ;;  %v333_v11 = vpack.c.bf16 %v331_v10, %v331_v10  ;;  %v2749_v14 = vld [vmem:[#allocation6 + $0x14] ss:$8 sps:$4 sm:$0xff]   ;;  %v3275_v46 = vshrl.u32 %v335_v45, 7  ;;  %vm434_vm1 = vcmask 1041408  }
  0x2a   :  { %v332_v9 = vpack.c.bf16 %v330_v8, %v329_v7  ;;  %v2746_v12 = vld [vmem:[#allocation6 + $0x4] ss:$8 sps:$4 sm:$0xff]   ;;  %v2744_v13 = vld [vmem:[#allocation6] ss:$8 sps:$4 sm:$0xff]   ;;  %v2747_v15 = vld [vmem:[#allocation6 + $0x10] ss:$8 sps:$4 sm:$0xff]  }
  0x2b   :  { %v2752_v16 = vld [vmem:[#allocation6 + $0x24] ss:$8 sps:$4 sm:$0xff]   ;;  %v2750_v17 = vld [vmem:[#allocation6 + $0x20] ss:$8 sps:$4 sm:$0xff]   ;;  %v2755_v18 = vld [vmem:[#allocation6 + $0x34] ss:$8 sps:$4 sm:$0xff]  }
  0x2c   :  { %385 = vmatpush1.bf16.msra.mxu1 %v2740_v4  ;;  %v2753_v19 = vld [vmem:[#allocation6 + $0x30] ss:$8 sps:$4 sm:$0xff]   ;;  %v2758_v20 = vld [vmem:[#allocation6 + $0x44] ss:$8 sps:$4 sm:$0xff]   ;;  %v2756_v21 = vld [vmem:[#allocation6 + $0x40] ss:$8 sps:$4 sm:$0xff]  }
  0x2d   :  { %386 = vmatprep.subr.bf16.mxu1 %v2741_v5  ;;  %v2761_v22 = vld [vmem:[#allocation6 + $0x54] ss:$8 sps:$4 sm:$0xff]   ;;  %v2759_v23 = vld [vmem:[#allocation6 + $0x50] ss:$8 sps:$4 sm:$0xff]   ;;  %v2764_v24 = vld [vmem:[#allocation6 + $0x64] ss:$8 sps:$4 sm:$0xff]  }
  0x2e   :  { %v2762_v25 = vld [vmem:[#allocation6 + $0x60] ss:$8 sps:$4 sm:$0xff]   ;;  %v2767_v26 = vld [vmem:[#allocation6 + $0x74] ss:$8 sps:$4 sm:$0xff]   ;;  %v2765_v27 = vld [vmem:[#allocation6 + $0x70] ss:$8 sps:$4 sm:$0xff]  }
  0x2f   :  { %v2770_v28 = vld [vmem:[#allocation6 + $0x84] ss:$8 sps:$4 sm:$0xff]   ;;  %v2768_v29 = vld [vmem:[#allocation6 + $0x80] ss:$8 sps:$4 sm:$0xff]   ;;  %v2773_v30 = vld [vmem:[#allocation6 + $0x94] ss:$8 sps:$4 sm:$0xff]  }
  0x30   :  { %387 = vmatpush1.bf16.msra.mxu1 %v2743_v6  ;;  %v2771_v31 = vld [vmem:[#allocation6 + $0x90] ss:$8 sps:$4 sm:$0xff]   ;;  %v2776_v32 = vld [vmem:[#allocation6 + $0xa4] ss:$8 sps:$4 sm:$0xff]   ;;  %v2774_v33 = vld [vmem:[#allocation6 + $0xa0] ss:$8 sps:$4 sm:$0xff]  }
  0x31   :  { %1146 = vmatprep.subr.bf16.mxu1 %v2746_v12  ;;  %v2779_v34 = vld [vmem:[#allocation6 + $0xb4] ss:$8 sps:$4 sm:$0xff]   ;;  %v2777_v35 = vld [vmem:[#allocation6 + $0xb0] ss:$8 sps:$4 sm:$0xff]   ;;  %v2782_v36 = vld [vmem:[#allocation6 + $0xc4] ss:$8 sps:$4 sm:$0xff]  }
  0x32   :  { %v2780_v37 = vld [vmem:[#allocation6 + $0xc0] ss:$8 sps:$4 sm:$0xff]   ;;  %v2785_v38 = vld [vmem:[#allocation6 + $0xd4] ss:$8 sps:$4 sm:$0xff]   ;;  %v2783_v39 = vld [vmem:[#allocation6 + $0xd0] ss:$8 sps:$4 sm:$0xff]  }
  0x33   :  { %2438 = vmatmul.mubr.msk.bf16.vlgmr.msra.gmra.mrb[0].mxu1 %vm375_vm0, %v332_v9  ;;  %v2788_v40 = vld [vmem:[#allocation6 + $0xe4] ss:$8 sps:$4 sm:$0xff]   ;;  %v2786_v41 = vld [vmem:[#allocation6 + $0xe0] ss:$8 sps:$4 sm:$0xff]   ;;  %v2791_v42 = vld [vmem:[#allocation6 + $0xf4] ss:$8 sps:$4 sm:$0xff]  }
  0x34   :  { %424 = vmatprep.mubr.bf16.mxu1 %v3186_v0  ;;  %1147 = vmatpush1.bf16.msra.mxu1 %v2744_v13  ;;  %v2789_v43 = vld [vmem:[#allocation6 + $0xf0] ss:$8 sps:$4 sm:$0xff]   ;;  %v2794_v44 = vld [vmem:[#allocation6 + $0x104] ss:$8 sps:$4 sm:$0xff]   ;;  %v3278_v47 = vsub.s32 0, %v3275_v46  ;;  %v3284_v49 = vsub.s32 1, %v3275_v46 }
  0x35   :  { %1148 = vmatprep.subr.bf16.mxu1 %v2749_v14  ;;  %v315_v48 = vld [vmem:[%s3442_s5] ss:$8 sm:$0x3]  ;;  %s3188_s30 = smov [#allocation11]  }
  0x36   :  { %v338_v50 = vrot.slane %v315_v48, %v3278_v47  ;;  %v342_v51 = vrot.slane %v315_v48, %v3284_v49  ;;  %s2416_s7 = sshll.u32 %s3188_s30, 4  ;;  %s2417_s7 = int_to_ptr.vmem [resolvable:$true] %s2416_s7 }
  0x37   :  { %s3154_s8 = scalar_lea.vmem %s2417_s7, 32  ;;  %p3159_p3 = scmp.lt.s32.totalorder %s2417_s7, %s2417_s7 }
  0x38   :  { %1149 = vmatpush1.bf16.msra.mxu1 %v2747_v15  ;;  %p3155_p2 = scmp.ne.s32.totalorder %s2417_s7, %s3154_s8  ;;  %p3160_p4 = scmp.lt.s32.totalorder %s3154_s8, %s3154_s8 }
  0x39   :  { %1150 = vmatprep.subr.bf16.mxu1 %v2752_v16 }
  0x3a   :  { %p3161_p5 = por %p3160_p4, %p3159_p3 }
  0x3b   :  { %2439 = vmatmul.mubr.msk.bf16.gmra.mrb[4].mxu1 %vm375_vm0, %v333_v11 }
  0x3c   :  { %1151 = vmatpush1.bf16.msra.mxu1 %v2750_v17  ;;  %p3162_p6 = pnand %p3161_p5, %p3155_p2 }
  0x3d   :  { %1152 = vmatprep.subr.bf16.mxu1 %v2755_v18 }
  0x40   :  { %1153 = vmatpush1.bf16.msra.mxu1 %v2753_v19 }
  0x41   :  { %1154 = vmatprep.subr.bf16.mxu1 %v2758_v20 }
  0x44   :  { %1155 = vmatpush1.bf16.msra.mxu1 %v2756_v21 }
  0x45   :  { %1156 = vmatprep.subr.bf16.mxu1 %v2761_v22 }
  0x48   :  { %1157 = vmatpush1.bf16.msra.mxu1 %v2759_v23 }
  0x49   :  { %1158 = vmatprep.subr.bf16.mxu1 %v2764_v24 }
  0x4c   :  { %1159 = vmatpush1.bf16.msra.mxu1 %v2762_v25 }
  0x4d   :  { %1160 = vmatprep.subr.bf16.mxu1 %v2767_v26 }
  0x50   :  { %1161 = vmatpush1.bf16.msra.mxu1 %v2765_v27 }
  0x51   :  { %1162 = vmatprep.subr.bf16.mxu1 %v2770_v28 }
  0x54   :  { %1163 = vmatpush1.bf16.msra.mxu1 %v2768_v29 }
  0x55   :  { %1164 = vmatprep.subr.bf16.mxu1 %v2773_v30 }
  0x58   :  { %1165 = vmatpush1.bf16.msra.mxu1 %v2771_v31 }
  0x59   :  { %1166 = vmatprep.subr.bf16.mxu1 %v2776_v32 }
  0x5c   :  { %1167 = vmatpush1.bf16.msra.mxu1 %v2774_v33 }
  0x5d   :  { %1168 = vmatprep.subr.bf16.mxu1 %v2779_v34 }
  0x60   :  { %1169 = vmatpush1.bf16.msra.mxu1 %v2777_v35 }
  0x61   :  { %1170 = vmatprep.subr.bf16.mxu1 %v2782_v36 }
  0x64   :  { %1171 = vmatpush1.bf16.msra.mxu1 %v2780_v37 }
  0x65   :  { %1172 = vmatprep.subr.bf16.mxu1 %v2785_v38 }
  0x68   :  { %1173 = vmatpush1.bf16.msra.mxu1 %v2783_v39 }
  0x69   :  { %1174 = vmatprep.subr.bf16.mxu1 %v2788_v40 }
  0x6c   :  { %1175 = vmatpush1.bf16.msra.mxu1 %v2786_v41 }
  0x6d   :  { %1176 = vmatprep.subr.bf16.mxu1 %v2791_v42 }
  0x70   :  { %1177 = vmatpush1.bf16.msra.mxu1 %v2789_v43 }
  0x71   :  { %1187 = vmatprep.subr.bf16.mxu1 %v2794_v44 }
 0x106   :  { %v416_v52 = vpop.f32.mrb[0].mxu1 }
 0x107   :  { %v3288_v53 = vadd.f32 %v416_v52, %v338_v50  ;;  %v418_v54 = vpop.f32.mrb[1].mxu1 }
 0x108   :  { %v3290_v55 = vadd.f32 %v418_v54, %v342_v51  ;;  %v420_v56 = vpop.f32.mrb[2].mxu1 }
 0x109   :  { %v3292_v57 = vadd.f32 %v420_v56, %v338_v50  ;;  %v422_v58 = vpop.f32.mrb[3].mxu1  ;;  %v455_v60 = vmul.f32 %v3288_v53, %v3288_v53 }
 0x10a   :  { %v3294_v59 = vadd.f32 %v422_v58, %v342_v51  ;;  %v456_v63 = vmul.f32 %v3290_v55, %v3290_v55 }
 0x10b   :  { %v433_v61 = vadd.f32 %v3292_v57, %v3288_v53  ;;  %v457_v62 = vmul.f32 %v3292_v57, %v3292_v57 }
 0x10c   :  { %v443_v0 = vadd.f32 %v3294_v59, %v3290_v55  ;;  %v458_v1 = vmul.f32 %v3294_v59, %v3294_v59 }
 0x10d   :  { %v461_v2 = vadd.f32 %v457_v62, %v455_v60 }
 0x10e   :  { %v470_v3 = vadd.f32 %v458_v1, %v456_v63  ;;  %v426_v4 = vpop.f32.mrb[4].mxu1  ;;  %v2426_v1 = vld [vmem:[%s3442_s5 + $0x1] ss:$8 sm:$0x3] }
 0x10f   :  { %v427_v5 = vadd.f32 %v426_v4, %v338_v50  ;;  %v428_v6 = vpop.f32.mrb[5].mxu1 }
 0x110   :  { %v429_v7 = vadd.f32 %v428_v6, %v342_v51  ;;  %v430_v8 = vpop.f32.mrb[6].mxu1 }
 0x111   :  { %v435_v9 = vsel %vm434_vm1, %v427_v5, 0.0  ;;  %v459_v10 = vmul.f32 %v427_v5, %v427_v5  ;;  %v431_v11 = vpop.f32.mrb[7].mxu1 }
 0x112   :  { %v436_v12 = vadd.f32 %v435_v9, %v433_v61  ;;  %v444_v13 = vsel %vm434_vm1, %v429_v7, 0.0  ;;  %v460_v14 = vmul.f32 %v429_v7, %v429_v7 }
 0x113   :  { %v462_v15 = vsel %vm434_vm1, %v459_v10, 0.0  ;;  %v445_v16 = vadd.f32 %v444_v13, %v443_v0 }
 0x114   :  { %v437_v17 = vrot.slane %v436_v12, 4  ;;  %v463_v18 = vadd.f32 %v462_v15, %v461_v2  ;;  %v471_v19 = vsel %vm434_vm1, %v460_v14, 0.0 }
 0x115   :  { %v446_v20 = vrot.slane %v445_v16, 4  ;;  %v472_v21 = vadd.f32 %v471_v19, %v470_v3 }
 0x116   :  { %v438_v22 = vadd.f32 %v437_v17, %v436_v12  ;;  %v464_v23 = vrot.slane %v463_v18, 4 }
 0x117   :  { %v447_v24 = vadd.f32 %v446_v20, %v445_v16  ;;  %v473_v25 = vrot.slane %v472_v21, 4 }
 0x118   :  { %v439_v26 = vrot.slane %v438_v22, 2  ;;  %v465_v27 = vadd.f32 %v464_v23, %v463_v18 }
 0x119   :  { %v448_v28 = vrot.slane %v447_v24, 2  ;;  %v474_v29 = vadd.f32 %v473_v25, %v472_v21 }
 0x11a   :  { %v440_v30 = vadd.f32 %v439_v26, %v438_v22  ;;  %v466_v31 = vrot.slane %v465_v27, 2 }
 0x11b   :  { %v449_v32 = vadd.f32 %v448_v28, %v447_v24  ;;  %v475_v33 = vrot.slane %v474_v29, 2 }
 0x11c   :  { %v441_v34 = vrot.slane %v440_v30, 1  ;;  %v467_v35 = vadd.f32 %v466_v31, %v465_v27 }
 0x11d   :  { %v450_v36 = vrot.slane %v449_v32, 1  ;;  %v476_v37 = vadd.f32 %v475_v33, %v474_v29 }
 0x11e   :  { %v442_v38 = vadd.f32 %v441_v34, %v440_v30  ;;  %v468_v39 = vrot.slane %v467_v35, 1 }
 0x11f   :  { %v451_v40 = vadd.f32 %v450_v36, %v449_v32  ;;  %v477_v41 = vrot.slane %v476_v37, 1 }
 0x120   :  { %v453_v42 = vmul.f32 0.055555556, %v442_v38  ;;  %v469_v43 = vadd.f32 %v468_v39, %v467_v35 }
 0x121   :  { %v454_v44 = vmul.f32 0.055555556, %v451_v40  ;;  %v478_v45 = vadd.f32 %v477_v41, %v476_v37 }
 0x122   :  { %v479_v48 = vmul.f32 0.055555556, %v469_v43  ;;  %v481_v50 = vmul.f32 %v453_v42, %v453_v42  ;;  %v485_v51 = vsub.f32 %v3288_v53, %v453_v42  ;;  %v487_v52 = vsub.f32 %v3292_v57, %v453_v42  ;;  %v2427_v53 = vld [vmem:[%s3442_s5 + $0x2] ss:$8 sm:$0x3] }
 0x123   :  { %v480_v54 = vmul.f32 0.055555556, %v478_v45  ;;  %v482_v56 = vmul.f32 %v454_v44, %v454_v44  ;;  %v486_v58 = vsub.f32 %v3290_v55, %v454_v44  ;;  %v488_v61 = vsub.f32 %v3294_v59, %v454_v44 }
 0x124   :  { %v483_v60 = vsub.f32 %v479_v48, %v481_v50  ;;  %v505_v57 = vrot.slane %v2426_v1, %v3278_v47  ;;  %v509_v55 = vrot.slane %v2426_v1, %v3284_v49  ;;  %v522_v5 = vrot.slane %v2427_v53, %v3278_v47 }
 0x125   :  { %v484_v62 = vsub.f32 %v480_v54, %v482_v56  ;;  %v526_v8 = vrot.slane %v2427_v53, %v3284_v49 }
 0x126   :  { %v491_v63 = vadd.f32 1e-05, %v483_v60 }
 0x127   :  { %v492_v0 = vadd.f32 1e-05, %v484_v62 }
 0x128   :  { %3102 = vrsqrt.f32 %v491_v63 }
 0x129   :  { %3104 = vrsqrt.f32 %v492_v0 }
 0x132   :  { %v3103_v2 = vpop.eup %3102 }
 0x133   :  { %v3105_v3 = vpop.eup %3104  ;;  %v495_v59 = vmul.f32 %v3103_v2, %v485_v51  ;;  %v497_v4 = vmul.f32 %v3103_v2, %v487_v52 }
 0x134   :  { %v496_v6 = vmul.f32 %v3105_v3, %v486_v58  ;;  %v498_v7 = vmul.f32 %v3105_v3, %v488_v61 }
 0x135   :  { %v512_v9 = vmul.f32 %v505_v57, %v495_v59  ;;  %v514_v10 = vmul.f32 %v505_v57, %v497_v4  ;;  %v2792_v59 = vld [vmem:[#allocation6 + $0x100] ss:$8 sps:$4 sm:$0xff]  }
 0x136   :  { %v513_v11 = vmul.f32 %v509_v55, %v496_v6  ;;  %v515_v12 = vmul.f32 %v509_v55, %v498_v7  ;;  %v2797_v6 = vld [vmem:[#allocation6 + $0x114] ss:$8 sps:$4 sm:$0xff]  }
 0x137   :  { %v529_v13 = vadd.f32 %v522_v5, %v512_v9  ;;  %v531_v14 = vadd.f32 %v522_v5, %v514_v10  ;;  %v2800_v9 = vld [vmem:[#allocation6 + $0x124] ss:$8 sps:$4 sm:$0xff]   ;;  %v2798_v10 = vld [vmem:[#allocation6 + $0x120] ss:$8 sps:$4 sm:$0xff]  }
 0x138   :  { %v530_v15 = vadd.f32 %v526_v8, %v513_v11  ;;  %v532_v16 = vadd.f32 %v526_v8, %v515_v12  ;;  %v2795_v8 = vld [vmem:[#allocation6 + $0x110] ss:$8 sps:$4 sm:$0xff]   ;;  %v2803_v11 = vld [vmem:[#allocation6 + $0x134] ss:$8 sps:$4 sm:$0xff]  }
 0x139   :  { %v535_v17 = vmax.f32 %v529_v13, 0.0  ;;  %v537_v18 = vmax.f32 %v531_v14, 0.0  ;;  %v2801_v12 = vld [vmem:[#allocation6 + $0x130] ss:$8 sps:$4 sm:$0xff]   ;;  %v2806_v13 = vld [vmem:[#allocation6 + $0x144] ss:$8 sps:$4 sm:$0xff]  }
 0x13a   :  { %v536_v19 = vmax.f32 %v530_v15, 0.0  ;;  %v538_v20 = vmax.f32 %v532_v16, 0.0  ;;  %v2804_v14 = vld [vmem:[#allocation6 + $0x140] ss:$8 sps:$4 sm:$0xff]   ;;  %v2809_v15 = vld [vmem:[#allocation6 + $0x154] ss:$8 sps:$4 sm:$0xff]  }
 0x13b   :  { %541 = vst [vmem:[#allocation2] sm:$0xff] %v535_v17  ;;  %543 = vst [vmem:[#allocation2 + $0x10] sm:$0xff] %v537_v18  ;;  %v2807_v16 = vld [vmem:[#allocation6 + $0x150] ss:$8 sps:$4 sm:$0xff]   ;;  %v2812_v17 = vld [vmem:[#allocation6 + $0x164] ss:$8 sps:$4 sm:$0xff]  }
 0x13c   :  { %542 = vst [vmem:[#allocation2 + $0x8] sm:$0xff] %v536_v19  ;;  %544 = vst [vmem:[#allocation2 + $0x18] sm:$0xff] %v538_v20  ;;  %v2810_v18 = vld [vmem:[#allocation6 + $0x160] ss:$8 sps:$4 sm:$0xff]   ;;  %v2815_v19 = vld [vmem:[#allocation6 + $0x174] ss:$8 sps:$4 sm:$0xff]  }
 0x13d   :  { %v2813_v20 = vld [vmem:[#allocation6 + $0x170] ss:$8 sps:$4 sm:$0xff]  }
 0x142   :  { %v547_v21 = vld [vmem:[#allocation2] sm:$0x3]  ;;  %v571_v22 = vld [vmem:[#allocation2] sm:$0xc]  ;;  %v595_v23 = vld [vmem:[#allocation2] sm:$0xc0] }
 0x143   :  { %v548_v24 = vld [vmem:[#allocation2 + $0x8] sm:$0x3]  ;;  %v572_v25 = vld [vmem:[#allocation2 + $0x8] sm:$0xc]  ;;  %v596_v26 = vld [vmem:[#allocation2 + $0x8] sm:$0xc0] }
 0x144   :  { %549 = vst [vmem:[#allocation3] sm:$0x3] %v547_v21  ;;  %573 = vst [vmem:[#allocation3] sm:$0xc] %v571_v22  ;;  %v600_v27 = vrot.slane %v596_v26, 2  ;;  %v599_v29 = vrot.slane %v595_v23, 2 }
 0x145   :  { %550 = vst [vmem:[#allocation3 + $0x8] sm:$0x3] %v548_v24  ;;  %574 = vst [vmem:[#allocation3 + $0x8] sm:$0xc] %v572_v25  ;;  %v620_v28 = vld [vmem:[#allocation2 + $0x18] sm:$0x3] }
 0x146   :  { %v619_v30 = vld [vmem:[#allocation2 + $0x10] sm:$0x3]  ;;  %v624_v31 = vrot.slane %v620_v28, 2  ;;  %v552_v33 = vld [vmem:[#allocation2 + $0x8] sm:$0xc] }
 0x147   :  { %v623_v32 = vrot.slane %v619_v30, 2  ;;  %v576_v34 = vld [vmem:[#allocation2 + $0x8] sm:$0x30]  ;;  %604 = vst [vmem:[#allocation3 + $0x8] sm:$0x30] %v600_v27  ;;  %v556_v35 = vrot.slane %v552_v33, 2 }
 0x148   :  { %603 = vst [vmem:[#allocation3] sm:$0x30] %v599_v29  ;;  %v580_v36 = vrot.slane %v576_v34, 2  ;;  %v606_v37 = vld [vmem:[#allocation2 + $0x18] sm:$0x3] }
 0x149   :  { %v630_v38 = vld [vmem:[#allocation2 + $0x18] sm:$0xc]  ;;  %628 = vst [vmem:[#allocation3 + $0x8] sm:$0xc0] %v624_v31  ;;  %627 = vst [vmem:[#allocation3] sm:$0xc0] %v623_v32 }
 0x14a   :  { %v610_v39 = vrot.slane %v606_v37, 4  ;;  %v634_v40 = vrot.slane %v630_v38, 4  ;;  %v551_v41 = vld [vmem:[#allocation2] sm:$0xc]  ;;  %v575_v42 = vld [vmem:[#allocation2] sm:$0x30] }
 0x14b   :  { %560 = vst [vmem:[#allocation3 + $0x18] sm:$0x3] %v556_v35  ;;  %584 = vst [vmem:[#allocation3 + $0x18] sm:$0xc] %v580_v36  ;;  %v555_v43 = vrot.slane %v551_v41, 2  ;;  %v579_v44 = vrot.slane %v575_v42, 2 }
 0x14c   :  { %v605_v45 = vld [vmem:[#allocation2 + $0x10] sm:$0x3]  ;;  %v629_v48 = vld [vmem:[#allocation2 + $0x10] sm:$0xc]  ;;  %614 = vst [vmem:[#allocation3 + $0x18] sm:$0x30] %v610_v39 }
 0x14d   :  { %638 = vst [vmem:[#allocation3 + $0x18] sm:$0xc0] %v634_v40  ;;  %v609_v50 = vrot.slane %v605_v45, 4  ;;  %v633_v51 = vrot.slane %v629_v48, 4  ;;  %v562_v52 = vld [vmem:[#allocation2 + $0x8] sm:$0xc0] }
 0x14e   :  { %v586_v54 = vld [vmem:[#allocation2 + $0x18] sm:$0x3]  ;;  %559 = vst [vmem:[#allocation3 + $0x10] sm:$0x3] %v555_v43  ;;  %583 = vst [vmem:[#allocation3 + $0x10] sm:$0xc] %v579_v44 }
 0x14f   :  { %v566_v56 = vrot.slane %v562_v52, 6  ;;  %v590_v58 = vrot.slane %v586_v54, 6  ;;  %v616_v60 = vld [vmem:[#allocation2 + $0x18] sm:$0x30]  ;;  %v640_v61 = vld [vmem:[#allocation2 + $0x18] sm:$0xc0] }
 0x150   :  { %613 = vst [vmem:[#allocation3 + $0x10] sm:$0x30] %v609_v50  ;;  %637 = vst [vmem:[#allocation3 + $0x10] sm:$0xc0] %v633_v51  ;;  %v561_v62 = vld [vmem:[#allocation2] sm:$0xc0] }
 0x151   :  { %618 = vst [vmem:[#allocation3 + $0x28] sm:$0x30] %v616_v60  ;;  %642 = vst [vmem:[#allocation3 + $0x28] sm:$0xc0] %v640_v61  ;;  %v585_v63 = vld [vmem:[#allocation2 + $0x10] sm:$0x3] }
 0x152   :  { %570 = vst [vmem:[#allocation3 + $0x28] sm:$0x3] %v566_v56  ;;  %594 = vst [vmem:[#allocation3 + $0x28] sm:$0xc] %v590_v58  ;;  %v615_v0 = vld [vmem:[#allocation2 + $0x10] sm:$0x30] }
 0x153   :  { %v644_v1 = vld [vmem:[#allocation3 + $0x8] sm:$0xff]  ;;  %v643_v53 = vld [vmem:[#allocation3] sm:$0xff]  ;;  %v565_v57 = vrot.slane %v561_v62, 6  ;;  %v589_v2 = vrot.slane %v585_v63, 6  ;;  %617 = vst [vmem:[#allocation3 + $0x20] sm:$0x30] %v615_v0 }
 0x154   :  { %v639_v55 = vld [vmem:[#allocation2 + $0x10] sm:$0xc0]  ;;  %v650_v3 = vpack.c.bf16 %v644_v1, %v644_v1  ;;  %v649_v4 = vpack.c.bf16 %v643_v53, %v643_v53  ;;  %v646_v5 = vld [vmem:[#allocation3 + $0x18] sm:$0xff]  ;;  %v2819_v24 = vld [vmem:[#allocation6 + $0x190] ss:$8 sps:$4 sm:$0xff]  }
 0x155   :  { %641 = vst [vmem:[#allocation3 + $0x20] sm:$0xc0] %v639_v55  ;;  %569 = vst [vmem:[#allocation3 + $0x20] sm:$0x3] %v565_v57  ;;  %v652_v7 = vpack.c.bf16 %v646_v5, %v646_v5  ;;  %v2818_v21 = vld [vmem:[#allocation6 + $0x184] ss:$8 sps:$4 sm:$0xff]  }
 0x156   :  { %593 = vst [vmem:[#allocation3 + $0x20] sm:$0xc] %v589_v2  ;;  %1178 = vmatprep.mubr.bf16.mxu1 %v650_v3  ;;  %v2816_v22 = vld [vmem:[#allocation6 + $0x180] ss:$8 sps:$4 sm:$0xff]   ;;  %v2821_v23 = vld [vmem:[#allocation6 + $0x194] ss:$8 sps:$4 sm:$0xff]  }
 0x157   :  { %1179 = vmatmul.mubr.bf16.vlgmr.msra.gmra.mrb[8].mxu1 %v649_v4  ;;  %v2824_v25 = vld [vmem:[#allocation6 + $0x1a4] ss:$8 sps:$4 sm:$0xff]   ;;  %v2822_v26 = vld [vmem:[#allocation6 + $0x1a0] ss:$8 sps:$4 sm:$0xff]   ;;  %v2827_v27 = vld [vmem:[#allocation6 + $0x1b4] ss:$8 sps:$4 sm:$0xff]  }
 0x158   :  { %1188 = vmatpush1.bf16.msra.mxu1 %v2792_v59  ;;  %1219 = vmatprep.mubr.bf16.mxu1 %v652_v7  ;;  %v2825_v28 = vld [vmem:[#allocation6 + $0x1b0] ss:$8 sps:$4 sm:$0xff]   ;;  %v2830_v29 = vld [vmem:[#allocation6 + $0x1c4] ss:$8 sps:$4 sm:$0xff]   ;;  %v2828_v30 = vld [vmem:[#allocation6 + $0x1c0] ss:$8 sps:$4 sm:$0xff]  }
 0x159   :  { %1189 = vmatprep.subr.bf16.mxu1 %v2797_v6  ;;  %v2833_v31 = vld [vmem:[#allocation6 + $0x1d4] ss:$8 sps:$4 sm:$0xff]   ;;  %v2831_v32 = vld [vmem:[#allocation6 + $0x1d0] ss:$8 sps:$4 sm:$0xff]   ;;  %v2836_v33 = vld [vmem:[#allocation6 + $0x1e4] ss:$8 sps:$4 sm:$0xff]  }
 0x15a   :  { %v2834_v34 = vld [vmem:[#allocation6 + $0x1e0] ss:$8 sps:$4 sm:$0xff]   ;;  %v2839_v35 = vld [vmem:[#allocation6 + $0x1f4] ss:$8 sps:$4 sm:$0xff]   ;;  %v2837_v36 = vld [vmem:[#allocation6 + $0x1f0] ss:$8 sps:$4 sm:$0xff]  }
 0x15b   :  { %v2842_v37 = vld [vmem:[#allocation6 + $0x204] ss:$8 sps:$4 sm:$0xff]   ;;  %v648_v39 = vld [vmem:[#allocation3 + $0x28] sm:$0xff]  ;;  %v2840_v40 = vld [vmem:[#allocation6 + $0x200] ss:$8 sps:$4 sm:$0xff]  }
 0x15c   :  { %1190 = vmatpush1.bf16.msra.mxu1 %v2795_v8  ;;  %v645_v38 = vld [vmem:[#allocation3 + $0x10] sm:$0xff]  ;;  %v2845_v42 = vld [vmem:[#allocation6 + $0x214] ss:$8 sps:$4 sm:$0xff]   ;;  %v654_v43 = vpack.c.bf16 %v648_v39, %v648_v39  ;;  %v2843_v44 = vld [vmem:[#allocation6 + $0x210] ss:$8 sps:$4 sm:$0xff]  }
 0x15d   :  { %1191 = vmatprep.subr.bf16.mxu1 %v2800_v9  ;;  %v651_v41 = vpack.c.bf16 %v645_v38, %v645_v38  ;;  %v2848_v45 = vld [vmem:[#allocation6 + $0x224] ss:$8 sps:$4 sm:$0xff]   ;;  %v2846_v48 = vld [vmem:[#allocation6 + $0x220] ss:$8 sps:$4 sm:$0xff]   ;;  %v2851_v50 = vld [vmem:[#allocation6 + $0x234] ss:$8 sps:$4 sm:$0xff]  }
 0x15e   :  { %v2849_v51 = vld [vmem:[#allocation6 + $0x230] ss:$8 sps:$4 sm:$0xff]   ;;  %v2854_v52 = vld [vmem:[#allocation6 + $0x244] ss:$8 sps:$4 sm:$0xff]   ;;  %v2852_v54 = vld [vmem:[#allocation6 + $0x240] ss:$8 sps:$4 sm:$0xff]  }
 0x15f   :  { %v2857_v56 = vld [vmem:[#allocation6 + $0x254] ss:$8 sps:$4 sm:$0xff]   ;;  %v2855_v58 = vld [vmem:[#allocation6 + $0x250] ss:$8 sps:$4 sm:$0xff]   ;;  %v2860_v60 = vld [vmem:[#allocation6 + $0x264] ss:$8 sps:$4 sm:$0xff]  }
 0x160   :  { %1192 = vmatpush1.bf16.msra.mxu1 %v2798_v10  ;;  %v2858_v61 = vld [vmem:[#allocation6 + $0x260] ss:$8 sps:$4 sm:$0xff]   ;;  %v2863_v62 = vld [vmem:[#allocation6 + $0x274] ss:$8 sps:$4 sm:$0xff]   ;;  %v2861_v63 = vld [vmem:[#allocation6 + $0x270] ss:$8 sps:$4 sm:$0xff]  }
 0x161   :  { %1193 = vmatprep.subr.bf16.mxu1 %v2803_v11  ;;  %v2866_v0 = vld [vmem:[#allocation6 + $0x284] ss:$8 sps:$4 sm:$0xff]   ;;  %v2864_v1 = vld [vmem:[#allocation6 + $0x280] ss:$8 sps:$4 sm:$0xff]   ;;  %v2869_v53 = vld [vmem:[#allocation6 + $0x294] ss:$8 sps:$4 sm:$0xff]  }
 0x162   :  { %v2867_v57 = vld [vmem:[#allocation6 + $0x290] ss:$8 sps:$4 sm:$0xff]   ;;  %v2872_v2 = vld [vmem:[#allocation6 + $0x2a4] ss:$8 sps:$4 sm:$0xff]   ;;  %v2870_v55 = vld [vmem:[#allocation6 + $0x2a0] ss:$8 sps:$4 sm:$0xff]  }
 0x163   :  { %v2875_v3 = vld [vmem:[#allocation6 + $0x2b4] ss:$8 sps:$4 sm:$0xff]   ;;  %v2873_v59 = vld [vmem:[#allocation6 + $0x2b0] ss:$8 sps:$4 sm:$0xff]   ;;  %v2878_v4 = vld [vmem:[#allocation6 + $0x2c4] ss:$8 sps:$4 sm:$0xff]  }
 0x164   :  { %1194 = vmatpush1.bf16.msra.mxu1 %v2801_v12  ;;  %v2876_v5 = vld [vmem:[#allocation6 + $0x2c0] ss:$8 sps:$4 sm:$0xff]   ;;  %v2881_v6 = vld [vmem:[#allocation6 + $0x2d4] ss:$8 sps:$4 sm:$0xff]   ;;  %v2879_v7 = vld [vmem:[#allocation6 + $0x2d0] ss:$8 sps:$4 sm:$0xff]  }
 0x165   :  { %1195 = vmatprep.subr.bf16.mxu1 %v2806_v13  ;;  %v2884_v8 = vld [vmem:[#allocation6 + $0x2e4] ss:$8 sps:$4 sm:$0xff]   ;;  %v2882_v9 = vld [vmem:[#allocation6 + $0x2e0] ss:$8 sps:$4 sm:$0xff]   ;;  %v2887_v10 = vld [vmem:[#allocation6 + $0x2f4] ss:$8 sps:$4 sm:$0xff]  }
 0x166   :  { %v2885_v11 = vld [vmem:[#allocation6 + $0x2f0] ss:$8 sps:$4 sm:$0xff]   ;;  %v2924_v38 = vld [vmem:[#allocation9 + $0xc4] ss:$8 sps:$4 sm:$0xff]   ;;  %v2926_v39 = vld [vmem:[#allocation9 + $0xc0] ss:$8 sps:$4 sm:$0xff]  }
 0x167   :  { %v647_v12 = vld [vmem:[#allocation3 + $0x20] sm:$0xff] }
 0x168   :  { %1196 = vmatpush1.bf16.msra.mxu1 %v2804_v14  ;;  %v653_v13 = vpack.c.bf16 %v647_v12, %v647_v12  ;;  %v2888_v14 = vld [vmem:[#allocation9 + $0x4] ss:$8 sps:$4 sm:$0xff]  }
 0x169   :  { %1197 = vmatprep.subr.bf16.mxu1 %v2809_v15  ;;  %v2890_v15 = vld [vmem:[#allocation9] ss:$8 sps:$4 sm:$0xff]   ;;  %2105 = vmatprep.subr.bf16.mxu0 %v2888_v14 }
 0x16a   :  { %2106 = vmatpush1.bf16.msra.mxu0 %v2890_v15 }
 0x16c   :  { %1198 = vmatpush1.bf16.msra.mxu1 %v2807_v16  ;;  %v2891_v16 = vld [vmem:[#allocation9 + $0x14] ss:$8 sps:$4 sm:$0xff]  }
 0x16d   :  { %1199 = vmatprep.subr.bf16.mxu1 %v2812_v17  ;;  %v2893_v17 = vld [vmem:[#allocation9 + $0x10] ss:$8 sps:$4 sm:$0xff]   ;;  %2107 = vmatprep.subr.bf16.mxu0 %v2891_v16 }
 0x16e   :  { %2108 = vmatpush1.bf16.msra.mxu0 %v2893_v17 }
 0x170   :  { %1200 = vmatpush1.bf16.msra.mxu1 %v2810_v18  ;;  %v2894_v18 = vld [vmem:[#allocation9 + $0x24] ss:$8 sps:$4 sm:$0xff]  }
 0x171   :  { %1201 = vmatprep.subr.bf16.mxu1 %v2815_v19  ;;  %v2896_v19 = vld [vmem:[#allocation9 + $0x20] ss:$8 sps:$4 sm:$0xff]   ;;  %2109 = vmatprep.subr.bf16.mxu0 %v2894_v18 }
 0x172   :  { %2110 = vmatpush1.bf16.msra.mxu0 %v2896_v19 }
 0x174   :  { %1202 = vmatpush1.bf16.msra.mxu1 %v2813_v20  ;;  %v2897_v20 = vld [vmem:[#allocation9 + $0x34] ss:$8 sps:$4 sm:$0xff]  }
 0x175   :  { %1203 = vmatprep.subr.bf16.mxu1 %v2818_v21  ;;  %v2899_v21 = vld [vmem:[#allocation9 + $0x30] ss:$8 sps:$4 sm:$0xff]   ;;  %2111 = vmatprep.subr.bf16.mxu0 %v2897_v20 }
 0x176   :  { %2112 = vmatpush1.bf16.msra.mxu0 %v2899_v21 }
 0x178   :  { %1204 = vmatpush1.bf16.msra.mxu1 %v2816_v22  ;;  %v2900_v22 = vld [vmem:[#allocation9 + $0x44] ss:$8 sps:$4 sm:$0xff]  }
 0x179   :  { %1205 = vmatprep.subr.bf16.mxu1 %v2821_v23  ;;  %v2902_v23 = vld [vmem:[#allocation9 + $0x40] ss:$8 sps:$4 sm:$0xff]   ;;  %2113 = vmatprep.subr.bf16.mxu0 %v2900_v22 }
 0x17a   :  { %2114 = vmatpush1.bf16.msra.mxu0 %v2902_v23 }
 0x17c   :  { %1206 = vmatpush1.bf16.msra.mxu1 %v2819_v24  ;;  %v2903_v24 = vld [vmem:[#allocation9 + $0x54] ss:$8 sps:$4 sm:$0xff]  }
 0x17d   :  { %1207 = vmatprep.subr.bf16.mxu1 %v2824_v25  ;;  %v2905_v25 = vld [vmem:[#allocation9 + $0x50] ss:$8 sps:$4 sm:$0xff]   ;;  %2115 = vmatprep.subr.bf16.mxu0 %v2903_v24 }
 0x17e   :  { %2116 = vmatpush1.bf16.msra.mxu0 %v2905_v25 }
 0x180   :  { %1208 = vmatpush1.bf16.msra.mxu1 %v2822_v26  ;;  %v2906_v26 = vld [vmem:[#allocation9 + $0x64] ss:$8 sps:$4 sm:$0xff]  }
 0x181   :  { %1209 = vmatprep.subr.bf16.mxu1 %v2827_v27  ;;  %v2908_v27 = vld [vmem:[#allocation9 + $0x60] ss:$8 sps:$4 sm:$0xff]   ;;  %2117 = vmatprep.subr.bf16.mxu0 %v2906_v26 }
 0x182   :  { %2118 = vmatpush1.bf16.msra.mxu0 %v2908_v27 }
 0x184   :  { %1210 = vmatpush1.bf16.msra.mxu1 %v2825_v28  ;;  %v2909_v28 = vld [vmem:[#allocation9 + $0x74] ss:$8 sps:$4 sm:$0xff]  }
 0x185   :  { %1211 = vmatprep.subr.bf16.mxu1 %v2830_v29  ;;  %v2911_v29 = vld [vmem:[#allocation9 + $0x70] ss:$8 sps:$4 sm:$0xff]   ;;  %2119 = vmatprep.subr.bf16.mxu0 %v2909_v28 }
 0x186   :  { %2120 = vmatpush1.bf16.msra.mxu0 %v2911_v29 }
 0x188   :  { %1212 = vmatpush1.bf16.msra.mxu1 %v2828_v30  ;;  %v2912_v30 = vld [vmem:[#allocation9 + $0x84] ss:$8 sps:$4 sm:$0xff]  }
 0x189   :  { %1213 = vmatprep.subr.bf16.mxu1 %v2833_v31  ;;  %v2914_v31 = vld [vmem:[#allocation9 + $0x80] ss:$8 sps:$4 sm:$0xff]   ;;  %2121 = vmatprep.subr.bf16.mxu0 %v2912_v30 }
 0x18a   :  { %2122 = vmatpush1.bf16.msra.mxu0 %v2914_v31  ;;  %v2429_v31 = vld [vmem:[%s3442_s5 + $0x4] ss:$8 sm:$0x3] }
 0x18c   :  { %1214 = vmatpush1.bf16.msra.mxu1 %v2831_v32  ;;  %v2915_v32 = vld [vmem:[#allocation9 + $0x94] ss:$8 sps:$4 sm:$0xff]  }
 0x18d   :  { %1215 = vmatprep.subr.bf16.mxu1 %v2836_v33  ;;  %v2917_v33 = vld [vmem:[#allocation9 + $0x90] ss:$8 sps:$4 sm:$0xff]   ;;  %2123 = vmatprep.subr.bf16.mxu0 %v2915_v32  ;;  %v2430_v32 = vld [vmem:[%s3442_s5 + $0x5] ss:$8 sm:$0x3] }
 0x18e   :  { %2124 = vmatpush1.bf16.msra.mxu0 %v2917_v33 }
 0x190   :  { %1216 = vmatpush1.bf16.msra.mxu1 %v2834_v34  ;;  %v2918_v34 = vld [vmem:[#allocation9 + $0xa4] ss:$8 sps:$4 sm:$0xff]  }
 0x191   :  { %1217 = vmatprep.subr.bf16.mxu1 %v2839_v35  ;;  %v2920_v35 = vld [vmem:[#allocation9 + $0xa0] ss:$8 sps:$4 sm:$0xff]   ;;  %2125 = vmatprep.subr.bf16.mxu0 %v2918_v34  ;;  %v1316_v34 = vrot.slane %v2429_v31, %v3278_v47 }
 0x192   :  { %2126 = vmatpush1.bf16.msra.mxu0 %v2920_v35 }
 0x194   :  { %1218 = vmatpush1.bf16.msra.mxu1 %v2837_v36  ;;  %v2921_v36 = vld [vmem:[#allocation9 + $0xb4] ss:$8 sps:$4 sm:$0xff]  }
 0x195   :  { %1228 = vmatprep.subr.bf16.mxu1 %v2842_v37  ;;  %v2923_v37 = vld [vmem:[#allocation9 + $0xb0] ss:$8 sps:$4 sm:$0xff]   ;;  %2127 = vmatprep.subr.bf16.mxu0 %v2921_v36 }
 0x196   :  { %2128 = vmatpush1.bf16.msra.mxu0 %v2923_v37  ;;  %v1320_v37 = vrot.slane %v2429_v31, %v3284_v49  ;;  %v2978_v31 = vld [vmem:[#allocation9 + $0x1c4] ss:$8 sps:$4 sm:$0xff]  }
 0x197   :  { %1220 = vmatmul.mubr.bf16.vlgmr.msra.gmra.mrb[8].mxu1 %v651_v41  ;;  %2129 = vmatprep.subr.bf16.mxu0 %v2924_v38  ;;  %v2929_v41 = vld [vmem:[#allocation9 + $0xd0] ss:$8 sps:$4 sm:$0xff]  }
 0x198   :  { %1229 = vmatpush1.bf16.msra.mxu1 %v2840_v40  ;;  %1260 = vmatprep.mubr.bf16.mxu1 %v654_v43  ;;  %v2927_v40 = vld [vmem:[#allocation9 + $0xd4] ss:$8 sps:$4 sm:$0xff]   ;;  %v2932_v43 = vld [vmem:[#allocation9 + $0xe0] ss:$8 sps:$4 sm:$0xff]  }
 0x199   :  { %1230 = vmatprep.subr.bf16.mxu1 %v2845_v42  ;;  %v2930_v42 = vld [vmem:[#allocation9 + $0xe4] ss:$8 sps:$4 sm:$0xff]  }
 0x19a   :  { %2130 = vmatpush1.bf16.msra.mxu0 %v2926_v39 }
 0x19b   :  { %2131 = vmatprep.subr.bf16.mxu0 %v2927_v40  ;;  %v1329_v40 = vrot.slane %v2430_v32, %v3278_v47 }
 0x19c   :  { %1231 = vmatpush1.bf16.msra.mxu1 %v2843_v44  ;;  %v2933_v44 = vld [vmem:[#allocation9 + $0xf4] ss:$8 sps:$4 sm:$0xff]  }
 0x19d   :  { %1232 = vmatprep.subr.bf16.mxu1 %v2848_v45  ;;  %v2935_v45 = vld [vmem:[#allocation9 + $0xf0] ss:$8 sps:$4 sm:$0xff]  }
 0x19e   :  { %2132 = vmatpush1.bf16.msra.mxu0 %v2929_v41 }
 0x19f   :  { %2133 = vmatprep.subr.bf16.mxu0 %v2930_v42  ;;  %v1333_v42 = vrot.slane %v2430_v32, %v3284_v49  ;;  %v2976_v32 = vld [vmem:[#allocation9 + $0x1c0] ss:$8 sps:$4 sm:$0xff]  }
 0x1a0   :  { %1233 = vmatpush1.bf16.msra.mxu1 %v2846_v48  ;;  %v2942_v48 = vld [vmem:[#allocation9 + $0x104] ss:$8 sps:$4 sm:$0xff]  }
 0x1a1   :  { %1234 = vmatprep.subr.bf16.mxu1 %v2851_v50  ;;  %v2428_v50 = vld [vmem:[%s3442_s5 + $0x3] ss:$8 sm:$0x3] }
 0x1a2   :  { %2134 = vmatpush1.bf16.msra.mxu0 %v2932_v43 }
 0x1a3   :  { %2135 = vmatprep.subr.bf16.mxu0 %v2933_v44 }
 0x1a4   :  { %1235 = vmatpush1.bf16.msra.mxu1 %v2849_v51  ;;  %v659_v51 = vrot.slane %v2428_v50, %v3278_v47 }
 0x1a5   :  { %1236 = vmatprep.subr.bf16.mxu1 %v2854_v52  ;;  %v663_v52 = vrot.slane %v2428_v50, %v3284_v49 }
 0x1a6   :  { %2136 = vmatpush1.bf16.msra.mxu0 %v2935_v45 }
 0x1a7   :  { %2146 = vmatprep.subr.bf16.mxu0 %v2942_v48 }
 0x1a8   :  { %1237 = vmatpush1.bf16.msra.mxu1 %v2852_v54 }
 0x1a9   :  { %1238 = vmatprep.subr.bf16.mxu1 %v2857_v56 }
 0x1ac   :  { %1239 = vmatpush1.bf16.msra.mxu1 %v2855_v58 }
 0x1ad   :  { %1240 = vmatprep.subr.bf16.mxu1 %v2860_v60 }
 0x1b0   :  { %1241 = vmatpush1.bf16.msra.mxu1 %v2858_v61 }
 0x1b1   :  { %1242 = vmatprep.subr.bf16.mxu1 %v2863_v62 }
 0x1b4   :  { %1243 = vmatpush1.bf16.msra.mxu1 %v2861_v63 }
 0x1b5   :  { %1244 = vmatprep.subr.bf16.mxu1 %v2866_v0 }
 0x1b8   :  { %1245 = vmatpush1.bf16.msra.mxu1 %v2864_v1 }
 0x1b9   :  { %1246 = vmatprep.subr.bf16.mxu1 %v2869_v53 }
 0x1bc   :  { %1247 = vmatpush1.bf16.msra.mxu1 %v2867_v57 }
 0x1bd   :  { %1248 = vmatprep.subr.bf16.mxu1 %v2872_v2 }
 0x1c0   :  { %1249 = vmatpush1.bf16.msra.mxu1 %v2870_v55 }
 0x1c1   :  { %1250 = vmatprep.subr.bf16.mxu1 %v2875_v3 }
 0x1c4   :  { %1251 = vmatpush1.bf16.msra.mxu1 %v2873_v59 }
 0x1c5   :  { %1252 = vmatprep.subr.bf16.mxu1 %v2878_v4 }
 0x1c8   :  { %1253 = vmatpush1.bf16.msra.mxu1 %v2876_v5 }
 0x1c9   :  { %1254 = vmatprep.subr.bf16.mxu1 %v2881_v6 }
 0x1cc   :  { %1255 = vmatpush1.bf16.msra.mxu1 %v2879_v7 }
 0x1cd   :  { %1256 = vmatprep.subr.bf16.mxu1 %v2884_v8 }
 0x1d0   :  { %1257 = vmatpush1.bf16.msra.mxu1 %v2882_v9 }
 0x1d1   :  { %1258 = vmatprep.subr.bf16.mxu1 %v2887_v10 }
 0x1d4   :  { %1259 = vmatpush1.bf16.msra.mxu1 %v2885_v11 }
 0x1d7   :  { %1261 = vmatmul.mubr.bf16.vlgmr.msra.gmra.mrb[8].mxu1 %v653_v13 }
 0x2aa   :  { %v1262_v54 = vpop.f32.mrb[8].mxu1 }
 0x2ab   :  { %v2704_v56 = vadd.f32 %v1262_v54, %v659_v51  ;;  %v1264_v58 = vpop.f32.mrb[9].mxu1 }
 0x2ac   :  { %v2705_v60 = vadd.f32 %v1264_v58, %v663_v52  ;;  %v1266_v61 = vpop.f32.mrb[10].mxu1  ;;  %v3187_v52 = vmov 1983009808  }
 0x2ad   :  { %v1269_v62 = vrot.slane %v2704_v56, 4  ;;  %v1284_v63 = vmul.f32 %v2704_v56, %v2704_v56  ;;  %v1267_v0 = vpop.f32.mrb[11].mxu1  ;;  %v1362_v54 = vunpack.c.l.s4 %v3187_v52  ;;  %v3088_v52 = vld [vmem:[%s3441_s4 + $0x48] sm:$0xff]  }
 0x2ae   :  { %v1275_v1 = vrot.slane %v2705_v60, 4  ;;  %v1285_v53 = vmul.f32 %v2705_v60, %v2705_v60 }
 0x2af   :  { %v1270_v57 = vadd.f32 %v2704_v56, %v1269_v62  ;;  %v1286_v2 = vrot.slane %v1284_v63, 4 }
 0x2b0   :  { %v1276_v55 = vadd.f32 %v2705_v60, %v1275_v1  ;;  %v1292_v3 = vrot.slane %v1285_v53, 4 }
 0x2b1   :  { %v1271_v59 = vrot.slane %v1270_v57, 2  ;;  %v1287_v4 = vadd.f32 %v1286_v2, %v1284_v63 }
 0x2b2   :  { %v1277_v5 = vrot.slane %v1276_v55, 2  ;;  %v1293_v6 = vadd.f32 %v1292_v3, %v1285_v53 }
 0x2b3   :  { %v1272_v7 = vadd.f32 %v1271_v59, %v1270_v57  ;;  %v1288_v8 = vrot.slane %v1287_v4, 2 }
 0x2b4   :  { %v1278_v9 = vadd.f32 %v1277_v5, %v1276_v55  ;;  %v1294_v10 = vrot.slane %v1293_v6, 2  ;;  %v2940_v5 = vld [vmem:[#allocation9 + $0x100] ss:$8 sps:$4 sm:$0xff]  }
 0x2b5   :  { %v1273_v11 = vrot.slane %v1272_v7, 1  ;;  %v1289_v12 = vadd.f32 %v1288_v8, %v1287_v4  ;;  %v2945_v8 = vld [vmem:[#allocation9 + $0x114] ss:$8 sps:$4 sm:$0xff]  }
 0x2b6   :  { %v1279_v13 = vrot.slane %v1278_v9, 1  ;;  %v1295_v14 = vadd.f32 %v1294_v10, %v1293_v6  ;;  %v2943_v10 = vld [vmem:[#allocation9 + $0x110] ss:$8 sps:$4 sm:$0xff]  }
 0x2b7   :  { %v1274_v15 = vadd.f32 %v1273_v11, %v1272_v7  ;;  %v1290_v16 = vrot.slane %v1289_v12, 1  ;;  %v2948_v11 = vld [vmem:[#allocation9 + $0x124] ss:$8 sps:$4 sm:$0xff]  }
 0x2b8   :  { %v1280_v17 = vadd.f32 %v1279_v13, %v1278_v9  ;;  %v1296_v18 = vrot.slane %v1295_v14, 1  ;;  %v2951_v13 = vld [vmem:[#allocation9 + $0x134] ss:$8 sps:$4 sm:$0xff]  }
 0x2b9   :  { %v1282_v19 = vmul.f32 0.125, %v1274_v15  ;;  %v1291_v20 = vadd.f32 %v1290_v16, %v1289_v12  ;;  %v2946_v12 = vld [vmem:[#allocation9 + $0x120] ss:$8 sps:$4 sm:$0xff]   ;;  %v2954_v15 = vld [vmem:[#allocation9 + $0x144] ss:$8 sps:$4 sm:$0xff]  }
 0x2ba   :  { %v1283_v21 = vmul.f32 0.125, %v1280_v17  ;;  %v1297_v22 = vadd.f32 %v1296_v18, %v1295_v14  ;;  %v2949_v14 = vld [vmem:[#allocation9 + $0x130] ss:$8 sps:$4 sm:$0xff]   ;;  %v2952_v16 = vld [vmem:[#allocation9 + $0x140] ss:$8 sps:$4 sm:$0xff]  }
 0x2bb   :  { %v1298_v23 = vmul.f32 0.125, %v1291_v20  ;;  %v1300_v24 = vmul.f32 %v1282_v19, %v1282_v19  ;;  %v1304_v33 = vsub.f32 %v2704_v56, %v1282_v19  ;;  %v1363_v56 = vunpack.c.0.s8 %v1362_v54  ;;  %v2957_v17 = vld [vmem:[#allocation9 + $0x154] ss:$8 sps:$4 sm:$0xff]   ;;  %v2955_v18 = vld [vmem:[#allocation9 + $0x150] ss:$8 sps:$4 sm:$0xff]  }
 0x2bc   :  { %v1299_v25 = vmul.f32 0.125, %v1297_v22  ;;  %v1301_v26 = vmul.f32 %v1283_v21, %v1283_v21  ;;  %v1305_v36 = vsub.f32 %v2705_v60, %v1283_v21  ;;  %v2960_v19 = vld [vmem:[#allocation9 + $0x164] ss:$8 sps:$4 sm:$0xff]   ;;  %v2958_v20 = vld [vmem:[#allocation9 + $0x160] ss:$8 sps:$4 sm:$0xff]  }
 0x2bd   :  { %v1302_v27 = vsub.f32 %v1298_v23, %v1300_v24  ;;  %v3338_v58 = vsub.s32 %v1363_v56, %v3275_v46  ;;  %v2963_v21 = vld [vmem:[#allocation9 + $0x174] ss:$8 sps:$4 sm:$0xff]   ;;  %v2961_v22 = vld [vmem:[#allocation9 + $0x170] ss:$8 sps:$4 sm:$0xff]   ;;  %v2966_v23 = vld [vmem:[#allocation9 + $0x184] ss:$8 sps:$4 sm:$0xff]  }
 0x2be   :  { %v1303_v28 = vsub.f32 %v1299_v25, %v1301_v26  ;;  %v2964_v24 = vld [vmem:[#allocation9 + $0x180] ss:$8 sps:$4 sm:$0xff]   ;;  %v2969_v25 = vld [vmem:[#allocation9 + $0x194] ss:$8 sps:$4 sm:$0xff]   ;;  %v2967_v26 = vld [vmem:[#allocation9 + $0x190] ss:$8 sps:$4 sm:$0xff]  }
 0x2bf   :  { %v1306_v29 = vadd.f32 1e-05, %v1302_v27  ;;  %v2972_v27 = vld [vmem:[#allocation9 + $0x1a4] ss:$8 sps:$4 sm:$0xff]   ;;  %v2992_v54 = vld [vmem:[#allocation9 + $0x210] ss:$8 sps:$4 sm:$0xff]  }
 0x2c0   :  { %v1307_v30 = vadd.f32 1e-05, %v1303_v28  ;;  %v2970_v28 = vld [vmem:[#allocation9 + $0x1a0] ss:$8 sps:$4 sm:$0xff]   ;;  %v2997_v56 = vld [vmem:[#allocation9 + $0x224] ss:$8 sps:$4 sm:$0xff]  }
 0x2c1   :  { %3106 = vrsqrt.f32 %v1306_v29  ;;  %v2975_v29 = vld [vmem:[#allocation9 + $0x1b4] ss:$8 sps:$4 sm:$0xff]  }
 0x2c2   :  { %3108 = vrsqrt.f32 %v1307_v30  ;;  %v2973_v30 = vld [vmem:[#allocation9 + $0x1b0] ss:$8 sps:$4 sm:$0xff]  }
 0x2cb   :  { %v3107_v35 = vpop.eup %3106 }
 0x2cc   :  { %v3109_v38 = vpop.eup %3108  ;;  %v1310_v39 = vmul.f32 %v3107_v35, %v1304_v33  ;;  %v2981_v33 = vld [vmem:[#allocation9 + $0x1d4] ss:$8 sps:$4 sm:$0xff]   ;;  %v2984_v35 = vld [vmem:[#allocation9 + $0x1e4] ss:$8 sps:$4 sm:$0xff]  }
 0x2cd   :  { %v1311_v41 = vmul.f32 %v3109_v38, %v1305_v36  ;;  %v2987_v38 = vld [vmem:[#allocation9 + $0x1f4] ss:$8 sps:$4 sm:$0xff]  }
 0x2ce   :  { %v1323_v43 = vmul.f32 %v1316_v34, %v1310_v39  ;;  %v2979_v34 = vld [vmem:[#allocation9 + $0x1d0] ss:$8 sps:$4 sm:$0xff]  }
 0x2cf   :  { %v1324_v44 = vmul.f32 %v1320_v37, %v1311_v41  ;;  %v2982_v37 = vld [vmem:[#allocation9 + $0x1e0] ss:$8 sps:$4 sm:$0xff]   ;;  %v2990_v41 = vld [vmem:[#allocation9 + $0x204] ss:$8 sps:$4 sm:$0xff]  }
 0x2d0   :  { %v1336_v45 = vadd.f32 %v1329_v40, %v1323_v43  ;;  %v2985_v40 = vld [vmem:[#allocation9 + $0x1f0] ss:$8 sps:$4 sm:$0xff]   ;;  %v2988_v43 = vld [vmem:[#allocation9 + $0x200] ss:$8 sps:$4 sm:$0xff]  }
 0x2d1   :  { %v1337_v48 = vadd.f32 %v1333_v42, %v1324_v44 }
 0x2d2   :  { %v1338_v50 = vmax.f32 %v1336_v45, 0.0  ;;  %v2994_v45 = vld [vmem:[#allocation9 + $0x214] ss:$8 sps:$4 sm:$0xff]  }
 0x2d3   :  { %v1339_v51 = vmax.f32 %v1337_v48, 0.0 }
 0x2d4   :  { %1340 = vst [vmem:[#allocation4] sm:$0xff] %v1338_v50  ;;  %v3086_v50 = vld [vmem:[%s3441_s4 + $0x40] sm:$0xff]  }
 0x2d5   :  { %1341 = vst [vmem:[#allocation4 + $0x8] sm:$0xff] %v1339_v51  ;;  %v3087_v51 = vld [vmem:[%s3441_s4] sm:$0xff]   ;;  %2682 = vmatprep.subr.bf16.mxu1 %v3086_v50 }
 0x2d6   :  { %2683 = vmatpush3.bf16.msra.mxu1 %v3087_v51  ;;  %v3064_v50 = vld [vmem:[#allocation9 + $0x384] ss:$8 sps:$4 sm:$0xff]   ;;  %v3062_v51 = vld [vmem:[#allocation9 + $0x380] ss:$8 sps:$4 sm:$0xff]  }
 0x2d7   :  { %2684 = vmatprep.subr.bf16.mxu1 %v3088_v52  ;;  %v3067_v52 = vld [vmem:[#allocation9 + $0x394] ss:$8 sps:$4 sm:$0xff]  }
 0x2dc   :  { %v2936_v60 = vld [vmem:[#allocation4] ss:$8 sps:$4 sm:$0x33]   ;;  %v2937_v61 = vld [vmem:[#allocation4] ss:$8 sps:$4 sm:$0xcc]  }
 0x2dd   :  { %2536 = vst.sshfl [vmem:[#allocation5] sm:$0x33 pattern:$0x76325410] %v2936_v60  ;;  %v1367_v63 = vrot.slane %v2937_v61, %v3338_v58  ;;  %v3089_v60 = vld [vmem:[%s3441_s4 + $0x8] sm:$0xff]   ;;  %v3090_v61 = vld [vmem:[%s3441_s4 + $0x50] sm:$0xff]  }
 0x2de   :  { %v2938_v62 = vld [vmem:[#allocation4 + $0x4] ss:$8 sps:$4 sm:$0xcc]   ;;  %v2991_v1 = vld [vmem:[#allocation4 + $0x4] ss:$8 sps:$4 sm:$0x33]   ;;  %2685 = vmatpush3.bf16.msra.mxu1 %v3089_v60 }
 0x2df   :  { %v1396_v0 = vrot.slane %v2938_v62, %v3338_v58  ;;  %v1368_v53 = vcombine.high %v1367_v63, %v1367_v63  ;;  %2537 = vst.sshfl [vmem:[#allocation5 + $0x8] sm:$0x33 pattern:$0x76325410] %v2991_v1  ;;  %v2995_v62 = vld [vmem:[#allocation9 + $0x220] ss:$8 sps:$4 sm:$0xff]   ;;  %2686 = vmatprep.subr.bf16.mxu1 %v3090_v61 }
 0x2e0   :  { %v3000_v63 = vld [vmem:[#allocation9 + $0x234] ss:$8 sps:$4 sm:$0xff]   ;;  %v3068_v60 = vld [vmem:[#allocation9 + $0x3a0] ss:$8 sps:$4 sm:$0xff]  }
 0x2e1   :  { %v1397_v57 = vcombine.high %v1396_v0, %v1396_v0  ;;  %1370 = vst [vmem:[#allocation5 + $0x4] sm:$0xf] %v1368_v53  ;;  %v3091_v0 = vld [vmem:[%s3441_s4 + $0x10] sm:$0xff]   ;;  %v3092_v1 = vld [vmem:[%s3441_s4 + $0x58] sm:$0xff]  }
 0x2e2   :  { %v2998_v53 = vld [vmem:[#allocation9 + $0x230] ss:$8 sps:$4 sm:$0xff]   ;;  %2687 = vmatpush3.bf16.msra.mxu1 %v3091_v0  ;;  %v3073_v61 = vld [vmem:[#allocation9 + $0x3b4] ss:$8 sps:$4 sm:$0xff]   ;;  %v3074_v0 = vld [vmem:[#allocation9 + $0x3c0] ss:$8 sps:$4 sm:$0xff]  }
 0x2e3   :  { %1399 = vst [vmem:[#allocation5 + $0xc] sm:$0xf] %v1397_v57  ;;  %v3003_v57 = vld [vmem:[#allocation9 + $0x244] ss:$8 sps:$4 sm:$0xff]   ;;  %2688 = vmatprep.subr.bf16.mxu1 %v3092_v1  ;;  %v3079_v1 = vld [vmem:[#allocation9 + $0x3d4] ss:$8 sps:$4 sm:$0xff]  }
 0x2e8   :  { %v1400_v2 = vld [vmem:[#allocation5] sm:$0xff] }
 0x2e9   :  { %v1404_v55 = vcombine.high %v1400_v2, %v1400_v2  ;;  %v1411_v3 = vrot.slane %v1400_v2, %v3338_v58  ;;  %v3093_v2 = vld [vmem:[%s3441_s4 + $0x18] sm:$0xff]  }
 0x2ea   :  { %v3348_v36 = vld [vmem:[#allocation5 + $0x8] sm:$0xff]  ;;  %2689 = vmatpush3.bf16.msra.mxu1 %v3093_v2  ;;  %v3080_v2 = vld [vmem:[#allocation9 + $0x3e0] ss:$8 sps:$4 sm:$0xff]  }
 0x2eb   :  { %v1419_v46 = vcombine.high %v1411_v3, %v1411_v3  ;;  %v3344_v59 = vrot.slane %v1404_v55, %v3338_v58  ;;  %v1446_v7 = vpack.c.bf16 %v1411_v3, %v1411_v3  ;;  %v3352_v39 = vrot.slane %v3348_v36, %v3338_v58  ;;  %v3094_v55 = vld [vmem:[%s3441_s4 + $0x60] sm:$0xff]  }
 0x2ec   :  { %v3001_v3 = vld [vmem:[#allocation9 + $0x240] ss:$8 sps:$4 sm:$0xff]   ;;  %2690 = vmatprep.subr.bf16.mxu1 %v3094_v55  ;;  %v3085_v55 = vld [vmem:[#allocation9 + $0x3f4] ss:$8 sps:$4 sm:$0xff]  }
 0x2ed   :  { %v1447_v4 = vpack.c.bf16 %v1419_v46, %v1419_v46  ;;  %v1420_v6 = vcombine.high %v3344_v59, %v3344_v59  ;;  %v1436_v42 = vcombine.high %v3352_v39, %v3352_v39  ;;  %v1448_v44 = vpack.c.bf16 %v3344_v59, %v3344_v59  ;;  %v3006_v46 = vld [vmem:[#allocation9 + $0x254] ss:$8 sps:$4 sm:$0xff]   ;;  %v3095_v59 = vld [vmem:[%s3441_s4 + $0x20] sm:$0xff]  }
 0x2ee   :  { %2691 = vmatpush3.bf16.msra.mxu1 %v3095_v59  ;;  %v3098_v59 = vld [vmem:[%s3441_s4 + $0x70] sm:$0xff]  }
 0x2ef   :  { %2137 = vmatprep.mubr.bf16.mxu0 %v1447_v4  ;;  %v1449_v9 = vpack.c.bf16 %v1420_v6, %v1420_v6  ;;  %v1451_v48 = vpack.c.bf16 %v1436_v42, %v1436_v42  ;;  %v3096_v4 = vld [vmem:[%s3441_s4 + $0x68] sm:$0xff]   ;;  %v3053_v42 = vld [vmem:[#allocation9 + $0x350] ss:$8 sps:$4 sm:$0xff]  }
 0x2f0   :  { %2138 = vmatmul.mubr.bf16.vlgmr.msra.gmra.mrb[0].mxu0 %v1446_v7  ;;  %v3009_v6 = vld [vmem:[#allocation9 + $0x264] ss:$8 sps:$4 sm:$0xff]   ;;  %2692 = vmatprep.subr.bf16.mxu1 %v3096_v4  ;;  %v3099_v4 = vld [vmem:[%s3441_s4 + $0x30] sm:$0xff]  }
 0x2f1   :  { %2147 = vmatpush1.bf16.msra.mxu0 %v2940_v5  ;;  %2178 = vmatprep.mubr.bf16.mxu0 %v1449_v9  ;;  %v3004_v5 = vld [vmem:[#allocation9 + $0x250] ss:$8 sps:$4 sm:$0xff]   ;;  %v3097_v7 = vld [vmem:[%s3441_s4 + $0x28] sm:$0xff]   ;;  %v3012_v9 = vld [vmem:[#allocation9 + $0x274] ss:$8 sps:$4 sm:$0xff]  }
 0x2f2   :  { %2148 = vmatprep.subr.bf16.mxu0 %v2945_v8  ;;  %v3007_v8 = vld [vmem:[#allocation9 + $0x260] ss:$8 sps:$4 sm:$0xff]   ;;  %2693 = vmatpush3.bf16.msra.mxu1 %v3097_v7  ;;  %v2431_v7 = vld [vmem:[%s3442_s5 + $0x6] ss:$8 sm:$0x3] }
 0x2f3   :  { %2694 = vmatprep.subr.bf16.mxu1 %v3098_v59 }
 0x2f5   :  { %2149 = vmatpush1.bf16.msra.mxu0 %v2943_v10  ;;  %v3010_v10 = vld [vmem:[#allocation9 + $0x270] ss:$8 sps:$4 sm:$0xff]  }
 0x2f6   :  { %2150 = vmatprep.subr.bf16.mxu0 %v2948_v11  ;;  %v3015_v11 = vld [vmem:[#allocation9 + $0x284] ss:$8 sps:$4 sm:$0xff]   ;;  %2695 = vmatpush3.bf16.msra.mxu1 %v3099_v4 }
 0x2f9   :  { %2151 = vmatpush1.bf16.msra.mxu0 %v2946_v12  ;;  %v3013_v12 = vld [vmem:[#allocation9 + $0x280] ss:$8 sps:$4 sm:$0xff]  }
 0x2fa   :  { %2152 = vmatprep.subr.bf16.mxu0 %v2951_v13  ;;  %v3018_v13 = vld [vmem:[#allocation9 + $0x294] ss:$8 sps:$4 sm:$0xff]  }
 0x2fd   :  { %2153 = vmatpush1.bf16.msra.mxu0 %v2949_v14  ;;  %v3016_v14 = vld [vmem:[#allocation9 + $0x290] ss:$8 sps:$4 sm:$0xff]  }
 0x2fe   :  { %2154 = vmatprep.subr.bf16.mxu0 %v2954_v15  ;;  %v3021_v15 = vld [vmem:[#allocation9 + $0x2a4] ss:$8 sps:$4 sm:$0xff]  }
 0x301   :  { %2155 = vmatpush1.bf16.msra.mxu0 %v2952_v16  ;;  %v3019_v16 = vld [vmem:[#allocation9 + $0x2a0] ss:$8 sps:$4 sm:$0xff]  }
 0x302   :  { %2156 = vmatprep.subr.bf16.mxu0 %v2957_v17  ;;  %v3024_v17 = vld [vmem:[#allocation9 + $0x2b4] ss:$8 sps:$4 sm:$0xff]  }
 0x305   :  { %2157 = vmatpush1.bf16.msra.mxu0 %v2955_v18  ;;  %v3022_v18 = vld [vmem:[#allocation9 + $0x2b0] ss:$8 sps:$4 sm:$0xff]  }
 0x306   :  { %2158 = vmatprep.subr.bf16.mxu0 %v2960_v19  ;;  %v3027_v19 = vld [vmem:[#allocation9 + $0x2c4] ss:$8 sps:$4 sm:$0xff]  }
 0x309   :  { %2159 = vmatpush1.bf16.msra.mxu0 %v2958_v20  ;;  %v3025_v20 = vld [vmem:[#allocation9 + $0x2c0] ss:$8 sps:$4 sm:$0xff]  }
 0x30a   :  { %2160 = vmatprep.subr.bf16.mxu0 %v2963_v21  ;;  %v3030_v21 = vld [vmem:[#allocation9 + $0x2d4] ss:$8 sps:$4 sm:$0xff]  }
 0x30d   :  { %2161 = vmatpush1.bf16.msra.mxu0 %v2961_v22  ;;  %v3028_v22 = vld [vmem:[#allocation9 + $0x2d0] ss:$8 sps:$4 sm:$0xff]  }
 0x30e   :  { %2162 = vmatprep.subr.bf16.mxu0 %v2966_v23  ;;  %v3033_v23 = vld [vmem:[#allocation9 + $0x2e4] ss:$8 sps:$4 sm:$0xff]  }
 0x311   :  { %2163 = vmatpush1.bf16.msra.mxu0 %v2964_v24  ;;  %v1421_v24 = vcombine.high %v3348_v36, %v3348_v36  ;;  %v3044_v36 = vld [vmem:[#allocation9 + $0x320] ss:$8 sps:$4 sm:$0xff]  }
 0x312   :  { %2164 = vmatprep.subr.bf16.mxu0 %v2969_v25  ;;  %v3031_v25 = vld [vmem:[#allocation9 + $0x2e0] ss:$8 sps:$4 sm:$0xff]  }
 0x315   :  { %2165 = vmatpush1.bf16.msra.mxu0 %v2967_v26  ;;  %v3036_v26 = vld [vmem:[#allocation9 + $0x2f4] ss:$8 sps:$4 sm:$0xff]  }
 0x316   :  { %2166 = vmatprep.subr.bf16.mxu0 %v2972_v27  ;;  %v3397_v27 = vrot.slane %v1421_v24, %v3338_v58  ;;  %v3041_v58 = vld [vmem:[#allocation9 + $0x310] ss:$8 sps:$4 sm:$0xff]  }
 0x319   :  { %2167 = vmatpush1.bf16.msra.mxu0 %v2970_v28  ;;  %v3034_v28 = vld [vmem:[#allocation9 + $0x2f0] ss:$8 sps:$4 sm:$0xff]  }
 0x31a   :  { %2168 = vmatprep.subr.bf16.mxu0 %v2975_v29  ;;  %v3039_v29 = vld [vmem:[#allocation9 + $0x304] ss:$8 sps:$4 sm:$0xff]  }
 0x31d   :  { %2169 = vmatpush1.bf16.msra.mxu0 %v2973_v30  ;;  %v1437_v30 = vcombine.high %v3397_v27, %v3397_v27 }
 0x31e   :  { %2170 = vmatprep.subr.bf16.mxu0 %v2978_v31  ;;  %v3037_v31 = vld [vmem:[#allocation9 + $0x300] ss:$8 sps:$4 sm:$0xff]  }
 0x321   :  { %2171 = vmatpush1.bf16.msra.mxu0 %v2976_v32  ;;  %v1450_v32 = vpack.c.bf16 %v3352_v39, %v3352_v39  ;;  %v3055_v39 = vld [vmem:[#allocation9 + $0x354] ss:$8 sps:$4 sm:$0xff]  }
 0x322   :  { %2172 = vmatprep.subr.bf16.mxu0 %v2981_v33  ;;  %v3043_v33 = vld [vmem:[#allocation9 + $0x314] ss:$8 sps:$4 sm:$0xff]  }
 0x325   :  { %2173 = vmatpush1.bf16.msra.mxu0 %v2979_v34  ;;  %v1453_v34 = vpack.c.bf16 %v1437_v30, %v1437_v30 }
 0x326   :  { %2174 = vmatprep.subr.bf16.mxu0 %v2984_v35  ;;  %v3046_v35 = vld [vmem:[#allocation9 + $0x324] ss:$8 sps:$4 sm:$0xff]  }
 0x329   :  { %2175 = vmatpush1.bf16.msra.mxu0 %v2982_v37  ;;  %v3049_v37 = vld [vmem:[#allocation9 + $0x334] ss:$8 sps:$4 sm:$0xff]  }
 0x32a   :  { %2176 = vmatprep.subr.bf16.mxu0 %v2987_v38  ;;  %v3047_v38 = vld [vmem:[#allocation9 + $0x330] ss:$8 sps:$4 sm:$0xff]  }
 0x32d   :  { %2177 = vmatpush1.bf16.msra.mxu0 %v2985_v40  ;;  %v3052_v40 = vld [vmem:[#allocation9 + $0x344] ss:$8 sps:$4 sm:$0xff]  }
 0x32e   :  { %2187 = vmatprep.subr.bf16.mxu0 %v2990_v41  ;;  %v3050_v41 = vld [vmem:[#allocation9 + $0x340] ss:$8 sps:$4 sm:$0xff]  }
 0x330   :  { %2179 = vmatmul.mubr.bf16.vlgmr.msra.gmra.mrb[0].mxu0 %v1448_v44  ;;  %v3056_v44 = vld [vmem:[#allocation9 + $0x360] ss:$8 sps:$4 sm:$0xff]  }
 0x331   :  { %2188 = vmatpush1.bf16.msra.mxu0 %v2988_v43  ;;  %2219 = vmatprep.mubr.bf16.mxu0 %v1451_v48  ;;  %v3058_v43 = vld [vmem:[#allocation9 + $0x364] ss:$8 sps:$4 sm:$0xff]   ;;  %v3059_v48 = vld [vmem:[#allocation9 + $0x370] ss:$8 sps:$4 sm:$0xff]  }
 0x332   :  { %2189 = vmatprep.subr.bf16.mxu0 %v2994_v45  ;;  %v3061_v45 = vld [vmem:[#allocation9 + $0x374] ss:$8 sps:$4 sm:$0xff]  }
 0x335   :  { %2190 = vmatpush1.bf16.msra.mxu0 %v2992_v54  ;;  %v3065_v54 = vld [vmem:[#allocation9 + $0x390] ss:$8 sps:$4 sm:$0xff]  }
 0x336   :  { %2191 = vmatprep.subr.bf16.mxu0 %v2997_v56  ;;  %v3070_v56 = vld [vmem:[#allocation9 + $0x3a4] ss:$8 sps:$4 sm:$0xff]  }
 0x339   :  { %2192 = vmatpush1.bf16.msra.mxu0 %v2995_v62  ;;  %v3071_v62 = vld [vmem:[#allocation9 + $0x3b0] ss:$8 sps:$4 sm:$0xff]  }
 0x33a   :  { %2193 = vmatprep.subr.bf16.mxu0 %v3000_v63  ;;  %v3076_v63 = vld [vmem:[#allocation9 + $0x3c4] ss:$8 sps:$4 sm:$0xff]  }
 0x33d   :  { %2194 = vmatpush1.bf16.msra.mxu0 %v2998_v53  ;;  %v3077_v53 = vld [vmem:[#allocation9 + $0x3d0] ss:$8 sps:$4 sm:$0xff]  }
 0x33e   :  { %2195 = vmatprep.subr.bf16.mxu0 %v3003_v57  ;;  %v3082_v57 = vld [vmem:[#allocation9 + $0x3e4] ss:$8 sps:$4 sm:$0xff]  }
 0x341   :  { %2196 = vmatpush1.bf16.msra.mxu0 %v3001_v3  ;;  %v3083_v3 = vld [vmem:[#allocation9 + $0x3f0] ss:$8 sps:$4 sm:$0xff]  }
 0x342   :  { %2197 = vmatprep.subr.bf16.mxu0 %v3006_v46  ;;  %v1452_v46 = vpack.c.bf16 %v3397_v27, %v3397_v27 }
 0x345   :  { %2198 = vmatpush1.bf16.msra.mxu0 %v3004_v5  ;;  %v3100_v5 = vld [vmem:[%s3441_s4 + $0x78] sm:$0xff]  }
 0x346   :  { %2199 = vmatprep.subr.bf16.mxu0 %v3009_v6  ;;  %v3101_v6 = vld [vmem:[%s3441_s4 + $0x38] sm:$0xff]   ;;  %2696 = vmatprep.subr.bf16.mxu1 %v3100_v5 }
 0x347   :  { %2697 = vmatpush3.bf16.msra.mxu1 %v3101_v6 }
 0x349   :  { %2200 = vmatpush1.bf16.msra.mxu0 %v3007_v8  ;;  %v1458_v8 = vrot.slane %v2431_v7, %v3278_v47 }
 0x34a   :  { %2201 = vmatprep.subr.bf16.mxu0 %v3012_v9  ;;  %v1462_v9 = vrot.slane %v2431_v7, %v3284_v49 }
 0x34d   :  { %2202 = vmatpush1.bf16.msra.mxu0 %v3010_v10 }
 0x34e   :  { %2203 = vmatprep.subr.bf16.mxu0 %v3015_v11 }
 0x351   :  { %2204 = vmatpush1.bf16.msra.mxu0 %v3013_v12 }
 0x352   :  { %2205 = vmatprep.subr.bf16.mxu0 %v3018_v13 }
 0x355   :  { %2206 = vmatpush1.bf16.msra.mxu0 %v3016_v14 }
 0x356   :  { %2207 = vmatprep.subr.bf16.mxu0 %v3021_v15 }
 0x359   :  { %2208 = vmatpush1.bf16.msra.mxu0 %v3019_v16 }
 0x35a   :  { %2209 = vmatprep.subr.bf16.mxu0 %v3024_v17 }
 0x35d   :  { %2210 = vmatpush1.bf16.msra.mxu0 %v3022_v18 }
 0x35e   :  { %2211 = vmatprep.subr.bf16.mxu0 %v3027_v19 }
 0x361   :  { %2212 = vmatpush1.bf16.msra.mxu0 %v3025_v20 }
 0x362   :  { %2213 = vmatprep.subr.bf16.mxu0 %v3030_v21  ;;  %v328_v21 = vld [vmem:[%s3442_s5 + $0x7] ss:$0 sm:$0xff] }
 0x365   :  { %2214 = vmatpush1.bf16.msra.mxu0 %v3028_v22 }
 0x366   :  { %2215 = vmatprep.subr.bf16.mxu0 %v3033_v23 }
 0x369   :  { %2216 = vmatpush1.bf16.msra.mxu0 %v3031_v25 }
 0x36a   :  { %2217 = vmatprep.subr.bf16.mxu0 %v3036_v26 }
 0x36d   :  { %2218 = vmatpush1.bf16.msra.mxu0 %v3034_v28 }
 0x36e   :  { %2228 = vmatprep.subr.bf16.mxu0 %v3039_v29 }
 0x370   :  { %2220 = vmatmul.mubr.bf16.vlgmr.msra.gmra.mrb[0].mxu0 %v1450_v32 }
 0x371   :  { %2229 = vmatpush1.bf16.msra.mxu0 %v3037_v31  ;;  %2260 = vmatprep.mubr.bf16.mxu0 %v1453_v34 }
 0x372   :  { %2230 = vmatprep.subr.bf16.mxu0 %v3043_v33 }
 0x375   :  { %2231 = vmatpush1.bf16.msra.mxu0 %v3041_v58 }
 0x376   :  { %2232 = vmatprep.subr.bf16.mxu0 %v3046_v35 }
 0x379   :  { %2233 = vmatpush1.bf16.msra.mxu0 %v3044_v36 }
 0x37a   :  { %2234 = vmatprep.subr.bf16.mxu0 %v3049_v37 }
 0x37d   :  { %2235 = vmatpush1.bf16.msra.mxu0 %v3047_v38 }
 0x37e   :  { %2236 = vmatprep.subr.bf16.mxu0 %v3052_v40 }
 0x381   :  { %2237 = vmatpush1.bf16.msra.mxu0 %v3050_v41 }
 0x382   :  { %2238 = vmatprep.subr.bf16.mxu0 %v3055_v39 }
 0x385   :  { %2239 = vmatpush1.bf16.msra.mxu0 %v3053_v42 }
 0x386   :  { %2240 = vmatprep.subr.bf16.mxu0 %v3058_v43 }
 0x389   :  { %2241 = vmatpush1.bf16.msra.mxu0 %v3056_v44 }
 0x38a   :  { %2242 = vmatprep.subr.bf16.mxu0 %v3061_v45 }
 0x38d   :  { %2243 = vmatpush1.bf16.msra.mxu0 %v3059_v48 }
 0x38e   :  { %2244 = vmatprep.subr.bf16.mxu0 %v3064_v50 }
 0x391   :  { %2245 = vmatpush1.bf16.msra.mxu0 %v3062_v51 }
 0x392   :  { %2246 = vmatprep.subr.bf16.mxu0 %v3067_v52 }
 0x395   :  { %2247 = vmatpush1.bf16.msra.mxu0 %v3065_v54 }
 0x396   :  { %2248 = vmatprep.subr.bf16.mxu0 %v3070_v56 }
 0x399   :  { %2249 = vmatpush1.bf16.msra.mxu0 %v3068_v60 }
 0x39a   :  { %2250 = vmatprep.subr.bf16.mxu0 %v3073_v61 }
 0x39d   :  { %2251 = vmatpush1.bf16.msra.mxu0 %v3071_v62 }
 0x39e   :  { %2252 = vmatprep.subr.bf16.mxu0 %v3076_v63 }
 0x3a1   :  { %2253 = vmatpush1.bf16.msra.mxu0 %v3074_v0 }
 0x3a2   :  { %2254 = vmatprep.subr.bf16.mxu0 %v3079_v1 }
 0x3a5   :  { %2255 = vmatpush1.bf16.msra.mxu0 %v3077_v53 }
 0x3a6   :  { %2256 = vmatprep.subr.bf16.mxu0 %v3082_v57 }
 0x3a9   :  { %2257 = vmatpush1.bf16.msra.mxu0 %v3080_v2 }
 0x3aa   :  { %2258 = vmatprep.subr.bf16.mxu0 %v3085_v55 }
 0x3ad   :  { %2259 = vmatpush1.bf16.msra.mxu0 %v3083_v3 }
 0x3b0   :  { %2261 = vmatmul.mubr.bf16.vlgmr.msra.gmra.mrb[0].mxu0 %v1452_v46 }
 0x483   :  { %v2262_v10 = vpop.f32.mrb[0].mxu0 }
 0x484   :  { %v2706_v11 = vadd.f32 %v2262_v10, %v1458_v8  ;;  %v2264_v12 = vpop.f32.mrb[1].mxu0 }
 0x485   :  { %v2707_v13 = vadd.f32 %v2264_v12, %v1462_v9  ;;  %v2266_v14 = vpop.f32.mrb[2].mxu0 }
 0x486   :  { %v2269_v15 = vmax.f32 %v2706_v11, 0.0  ;;  %v2267_v16 = vpop.f32.mrb[3].mxu0 }
 0x487   :  { %v2270_v17 = vmax.f32 %v2707_v13, 0.0 }
 0x488   :  { %v2271_v19 = vpack.c.bf16 %v2269_v15, %v2269_v15 }
 0x489   :  { %v2272_v18 = vpack.c.bf16 %v2270_v17, %v2270_v17 }
 0x48b   :  { %2401 = vmatprep.mubr.bf16.mxu1 %v2272_v18 }
 0x48c   :  { %2402 = vmatmul.mubr.bf16.vlgmr.msra.gmra.mrb[12].mxu1 %v2271_v19 }
 0x55f   :  { %v2698_v20 = vpop.f32.mrb[12].mxu1 }
 0x560   :  { %v2699_v47 = vpop.f32.mrb[13].mxu1 }
 0x561   :  { %v2700_v49 = vadd.f32 %v2699_v47, %v2698_v20  ;;  %v2701_v22 = vpop.f32.mrb[14].mxu1 }
 0x562   :  { %v2702_v23 = vpop.f32.mrb[15].mxu1 }
 0x563   :  { %v2404_v24 = vadd.f32 %v2700_v49, %v328_v21 }
 0x565   :  { %2409 = vst [vmem:[#allocation11] sm:$0x3] %v2404_v24 }
 0x566   :  { %3165 = shalt.err (!%p3162_p6)
}
 0x567   :  { %s3166_s5 = scalar_lea.hbm %s3443_s6, 32 }
 0x568   :  { %p3167_p7 = scmp.ne.s32.totalorder %s3443_s6, %s3166_s5  ;;  %p3170_p8 = scmp.lt.u32.totalorder %s3166_s5, %s3443_s6 }
 0x56a   :  { %p3172_p9 = pnand %p3170_p8, %p3167_p7 }
 0x56c   :  { %3175 = shalt.err (!%p3172_p9)
}
 0x56d   :  { %2419 = dma.vmem_to_hbm [thread:$0]  %s2417_s7, 32, %s3443_s6, [#allocation8]  }
 0x56e   :  { %3180 = dma.done.wait [#allocation8], 32  }
 0x56f   :  { %3181 = vsyncadd [#allocation8], 4294967264 }
 0x570   :  { %2423 = vsyncpa [#allocation7], 1 }
 0x571   :  { %2424 = vsyncpa [#allocation10], 1 }
 0x572   :  { %2425 = vsyncpa [#allocation8], 1 }

</bundles_post_ra>
